<compile_context>
chip_gen: v7x
topology: tpu7x:2x2x1
jax: 0.10.0
libtpu: 0.0.40
codegen_flags: <defaults>
</compile_context>

<pallas_src>
import functools

import jax
import jax.numpy as jnp
from jax.experimental import pallas as pl
from jax.experimental.pallas import tpu as pltpu

LANE = 128
VMEM_LIMIT = 32 * 1024 * 1024  # safe scoped-VMEM limit on v5e / v6e / v7x


def _round_up(x, m):
    return (x + m - 1) // m * m


# -----------------------------------------------------------------------------
# Fused kernel: segment scatter-aggregate of raw edge features (MXU one-hot),
# then per-node-tile projection + norm + bias in the finalize step.
# -----------------------------------------------------------------------------
def _fused_kernel(tile_ids_ref, blk_ids_ref,                     # scalar prefetch (SMEM, 1-D)
                  ef_ref, dst_ref, w_ref, norm_ref, bias_ref,    # inputs (VMEM tiles)
                  out_ref,                                       # output tile
                  acc_ref, rows_ref,                             # scratch (VMEM)
                  *, tile_m, tile_e):
    k = pl.program_id(0)
    n_steps = pl.num_programs(0)

    tile_id = tile_ids_ref[k]
    prev_tile = tile_ids_ref[jnp.maximum(k - 1, 0)]
    next_tile = tile_ids_ref[jnp.minimum(k + 1, n_steps - 1)]
    is_first = jnp.logical_or(k == 0, tile_id != prev_tile)   # first step of this node tile
    is_last = jnp.logical_or(k == n_steps - 1, tile_id != next_tile)   # last step of this tile

    # Row-index map built once for the whole kernel (hoisted out of the inner loop).
    @pl.when(k == 0)
    def _fill_rows():
        rows_ref[...] = jax.lax.broadcasted_iota(jnp.int32, (tile_m, tile_e), 0)

    @pl.when(is_first)
    def _init():
        acc_ref[...] = jnp.zeros_like(acc_ref)

    # One-hot scatter map for this (node tile, edge block): padded edges carry dst = -1 and
    # edges belonging to other tiles fall outside [0, tile_m), so they never match a row.
    rel = dst_ref[...] - tile_id * tile_m                        # (1, tile_e) int32
    onehot = (rows_ref[...] == rel).astype(jnp.bfloat16)         # (tile_m, tile_e)
    # Scatter-first: products are exact (onehot in {0,1}); accumulate raw features in f32.
    acc_ref[...] += jnp.dot(onehot, ef_ref[...], preferred_element_type=jnp.float32)

    @pl.when(is_last)
    def _finalize():
        # Projection by the resident f32 weight, then norm='both' scaling + bias, once per tile.
        h = jnp.dot(acc_ref[...], w_ref[...], preferred_element_type=jnp.float32)
        out_ref[...] = (h * norm_ref[...] + bias_ref[...]).astype(out_ref.dtype)


# -----------------------------------------------------------------------------
# Wrapper: mirrors CircuitConv.forward (weight=True, bias=True, activation=None). Jittable.
# -----------------------------------------------------------------------------
def circuit_conv(gain, t1h, v, src, dst, weight, bias, *, num_nodes,
                 norm='both', tile_m=128, tile_e=512):
    n = int(num_nodes)
    e = int(src.shape[0])
    in_feats = gain.shape[1] + t1h.shape[1] + v.shape[1]
    out_feats = weight.shape[1]

    # ---- graph glue (plain JAX, traced/jittable): messages, degrees, dst-sort ----
    edge_feat = jnp.concatenate([gain[src], t1h, v], axis=-1)            # (E, in_feats)

    if norm == 'both':
        out_deg = jnp.clip(jnp.zeros((n,), jnp.float32).at[src].add(1.0), 1.0)
        in_deg = jnp.clip(jnp.zeros((n,), jnp.float32).at[dst].add(1.0), 1.0)
        node_norm = (out_deg ** -0.5) * (in_deg ** -0.5)
    elif norm == 'right':
        in_deg = jnp.clip(jnp.zeros((n,), jnp.float32).at[dst].add(1.0), 1.0)
        node_norm = 1.0 / in_deg
    elif norm == 'none':
        node_norm = jnp.ones((n,), jnp.float32)
    else:
        raise ValueError(f'Invalid norm value "{norm}".')

    order = jnp.argsort(dst)                   # contiguous per-destination segments
    edge_feat = edge_feat[order]
    dst_sorted = dst[order].astype(jnp.int32)

    # ---- static padded sizes ----
    in_pad = _round_up(in_feats, LANE)
    out_pad = _round_up(out_feats, LANE)
    e_pad = _round_up(max(e, tile_e), tile_e)
    n_tiles = _round_up(max(n, tile_m), tile_m) // tile_m          # real node tiles
    n_blocks = e_pad // tile_e
    n_pad = (n_tiles + 1) * tile_m         # +1 phantom tile absorbs padded schedule steps
    max_steps = n_tiles + n_blocks         # static bound: sum_t #blocks(t) <= n_tiles+n_blocks-1

    # ---- padded operands (lane-dense, 128-wide) ----
    edge_feat_p = jnp.zeros((e_pad, in_pad), jnp.bfloat16).at[:e, :in_feats].set(
        edge_feat.astype(jnp.bfloat16))
    weight_p = jnp.zeros((in_pad, out_pad), jnp.float32).at[:in_feats, :out_feats].set(
        weight.astype(jnp.float32))
    dst_row = jnp.full((1, e_pad), -1, jnp.int32).at[0, :e].set(dst_sorted)
    norm_p = jnp.zeros((n_pad, 1), jnp.float32).at[:n, 0].set(node_norm)
    bias_row = jnp.zeros((1, out_pad), jnp.float32).at[0, :out_feats].set(
        bias.astype(jnp.float32))

    # ---- flat (node-tile, edge-block) schedule, built on-device with jnp (no host sync) ----
    bounds = jnp.arange(n_tiles + 1, dtype=jnp.int32) * tile_m
    cuts = jnp.searchsorted(dst_sorted, bounds, side='left').astype(jnp.int32)
    starts, ends = cuts[:-1], cuts[1:]
    has = ends > starts
    b0 = jnp.where(has, starts // tile_e, 0)
    b1 = jnp.where(has, jnp.maximum(ends - 1, 0) // tile_e, 0)
    steps = jnp.where(has, b1 - b0 + 1, 1).astype(jnp.int32)       # >=1 step/tile (empty -> bias)
    cum = jnp.cumsum(steps)                                         # inclusive prefix sums
    offs = cum - steps
    s_idx = jnp.arange(max_steps, dtype=jnp.int32)
    tile_of = jnp.searchsorted(cum, s_idx, side='right').astype(jnp.int32)
    is_pad_step = tile_of >= n_tiles
    t_c = jnp.minimum(tile_of, n_tiles - 1)
    local = jnp.minimum(s_idx - offs[t_c], steps[t_c] - 1)          # clamp padding -> same block
    tile_ids = jnp.where(is_pad_step, n_tiles, t_c).astype(jnp.int32)   # phantom tile: no-op acc
    blk_ids = jnp.clip(b0[t_c] + local, 0, n_blocks - 1).astype(jnp.int32)

    # ---- fused Pallas kernel ----
    kern = functools.partial(_fused_kernel, tile_m=tile_m, tile_e=tile_e)
    out_p = pl.pallas_call(
        kern,
        out_shape=jax.ShapeDtypeStruct((n_pad, out_pad), jnp.float32),
        grid_spec=pltpu.PrefetchScalarGridSpec(
            num_scalar_prefetch=2,
            grid=(max_steps,),
            in_specs=[
                # raw edge-feature block (data-dependent block index from the flat schedule)
                pl.BlockSpec((tile_e, in_pad), lambda k, tids, bids: (bids[k], 0)),
                # dst ids of the same edge block
                pl.BlockSpec((1, tile_e),      lambda k, tids, bids: (0, bids[k])),
                # weight: resident across the whole grid (index never changes -> DMA'd once)
                pl.BlockSpec((in_pad, out_pad), lambda k, tids, bids: (0, 0)),
                # per-node norm for the current destination tile
                pl.BlockSpec((tile_m, 1),      lambda k, tids, bids: (tids[k], 0)),
                # bias row (lane-padded), resident
                pl.BlockSpec((1, out_pad),     lambda k, tids, bids: (0, 0)),
            ],
            out_specs=pl.BlockSpec((tile_m, out_pad), lambda k, tids, bids: (tids[k], 0)),
            scratch_shapes=[
                pltpu.VMEM((tile_m, in_pad), jnp.float32),   # f32 feature accumulator
                pltpu.VMEM((tile_m, tile_e), jnp.int32),     # hoisted row-iota
            ],
        ),
        compiler_params=pltpu.CompilerParams(
            dimension_semantics=("arbitrary",),   # output block is resident across same-tile steps
            vmem_limit_bytes=VMEM_LIMIT,
        ),
    )(tile_ids, blk_ids, edge_feat_p, dst_row, weight_p, norm_p, bias_row)

    # TODO(synk): self._activation is None by default in the module; no activation applied.
    return out_p[:n, :out_feats]


if __name__ == "__main__":
    key = jax.random.PRNGKey(0)

    # Small synthetic circuit graph (node count < tile_m and edge count < tile_e still exercise
    # the padded/phantom-step paths).
    N = 64            # nodes
    E = 256           # edges
    gain_dim = 16     # src node 'gain' feature
    t1h_dim = 8       # edge 't1h' feature
    v_dim = 8         # edge 'v' feature
    in_feats = gain_dim + t1h_dim + v_dim   # 32
    out_feats = 32

    k1, k2, k3, k4, k5, k6, k7 = jax.random.split(key, 7)
    src = jax.random.randint(k5, (E,), 0, N)
    dst = jax.random.randint(k6, (E,), 0, N)

    gain = jax.random.normal(k1, (N, gain_dim), dtype=jnp.float32)
    t1h = jax.random.normal(k2, (E, t1h_dim), dtype=jnp.float32)
    v = jax.random.normal(k3, (E, v_dim), dtype=jnp.float32)

    # Glorot-uniform weight; module inits bias to zero, use a small nonzero one here to
    # exercise the bias path in the test.
    limit = float(jnp.sqrt(6.0 / (in_feats + out_feats)))
    weight = jax.random.uniform(k4, (in_feats, out_feats),
                                minval=-limit, maxval=limit, dtype=jnp.float32)
    bias = 0.1 * jax.random.normal(k7, (out_feats,), dtype=jnp.float32)

    # Fully jittable end-to-end (schedule build + kernel).
    conv = jax.jit(functools.partial(circuit_conv, num_nodes=N, norm='both'))
    out = jax.block_until_ready(conv(gain, t1h, v, src, dst, weight, bias))
    assert out.shape == (N, out_feats) and out.dtype == jnp.float32

    # Pure-JAX reference. Only the edge features are bf16-quantized in the kernel (one-hot
    # products are exact, the weight stays f32), so quantize them the same way here; remaining
    # differences are summation order / MXU pass precision.
    edge_feat = jnp.concatenate([gain[src], t1h, v], axis=-1)
    out_deg = jnp.clip(jnp.zeros((N,), jnp.float32).at[src].add(1.0), 1.0)
    in_deg = jnp.clip(jnp.zeros((N,), jnp.float32).at[dst].add(1.0), 1.0)
    node_norm = (out_deg ** -0.5) * (in_deg ** -0.5)
    ef_q = edge_feat.astype(jnp.bfloat16).astype(jnp.float32)
    agg = jnp.zeros((N, in_feats), jnp.float32).at[dst].add(ef_q)
    ref = (agg @ weight) * node_norm[:, None] + bias[None, :]

    assert jnp.allclose(out, ref, atol=2e-2, rtol=2e-2), "mismatch vs reference"
    print("KERNEL_OK")
</pallas_src>

<mosaic_0001>
module attributes {stable_mosaic.version = 11 : i64} {
  func.func private @main(%arg0: i32) attributes {dimension_semantics = [#tpu.dimension_semantics<core_parallel>], iteration_bounds = array<i64: 2>, tpu.core_type = #tpu.core_type<sc_scalar_subcore>, window_params = []} {
    return
  }
}

module attributes {stable_mosaic.version = 11 : i64} {
  func.func private @main(%arg0: i32) attributes {dimension_semantics = [#tpu.dimension_semantics<core_parallel>], iteration_bounds = array<i64: 2>, tpu.core_type = #tpu.core_type<sc_scalar_subcore>, window_params = []} {
    return
  }
}

module attributes {stable_mosaic.version = 11 : i64} {
  func.func @_fused_kernel(%arg0: i32, %arg1: memref<2xi32, #tpu.memory_space<smem>>, %arg2: memref<2xi32, #tpu.memory_space<smem>>, %arg3: memref<512x128xbf16, #tpu.memory_space<vmem>>, %arg4: memref<1x512xi32, #tpu.memory_space<vmem>>, %arg5: memref<128x128xf32, #tpu.memory_space<vmem>>, %arg6: memref<128x1xf32, #tpu.memory_space<vmem>>, %arg7: memref<1x128xf32, #tpu.memory_space<vmem>>, %arg8: memref<128x128xf32, #tpu.memory_space<vmem>>, %arg9: memref<128x128xf32, #tpu.memory_space<vmem>>, %arg10: memref<128x512xi32, #tpu.memory_space<vmem>>) attributes {dimension_semantics = [#tpu.dimension_semantics<arbitrary>], iteration_bounds = array<i64: 2>, scalar_prefetch = 2 : i64, scratch_operands = 2 : i64, tpu.core_type = #tpu.core_type<tc>, window_params = [{transform_indices = @transform_0, window_bounds = array<i64: 512, 128>}, {transform_indices = @transform_1, window_bounds = array<i64: 1, 512>}, {pipeline_mode = #tpu.pipeline_mode<synchronous>, transform_indices = @transform_2, window_bounds = array<i64: 128, 128>}, {transform_indices = @transform_3, window_bounds = array<i64: 128, 1>}, {pipeline_mode = #tpu.pipeline_mode<synchronous>, transform_indices = @transform_4, window_bounds = array<i64: 1, 128>}, {transform_indices = @transform_5, window_bounds = array<i64: 128, 128>}]} {
    %0 = arith.index_cast %arg0 : i32 to index
    %1 = memref.load %arg1[%0] : memref<2xi32, #tpu.memory_space<smem>>
    %c1_i32 = arith.constant 1 : i32
    %2 = arith.subi %arg0, %c1_i32 : i32
    %c0_i32 = arith.constant 0 : i32
    %3 = arith.maxsi %2, %c0_i32 : i32
    %4 = arith.index_cast %3 : i32 to index
    %5 = memref.load %arg1[%4] : memref<2xi32, #tpu.memory_space<smem>>
    %c1_i32_0 = arith.constant 1 : i32
    %6 = arith.addi %arg0, %c1_i32_0 : i32
    %c1_i32_1 = arith.constant 1 : i32
    %7 = arith.minsi %6, %c1_i32_1 : i32
    %8 = arith.index_cast %7 : i32 to index
    %9 = memref.load %arg1[%8] : memref<2xi32, #tpu.memory_space<smem>>
    %c0_i32_2 = arith.constant 0 : i32
    %10 = arith.cmpi eq, %arg0, %c0_i32_2 : i32
    %11 = arith.cmpi ne, %1, %5 : i32
    %12 = arith.ori %10, %11 : i1
    %c1_i32_3 = arith.constant 1 : i32
    %13 = arith.cmpi eq, %arg0, %c1_i32_3 : i32
    %14 = arith.cmpi ne, %1, %9 : i32
    %15 = arith.ori %13, %14 : i1
    %c0_i32_4 = arith.constant 0 : i32
    %16 = arith.cmpi eq, %arg0, %c0_i32_4 : i32
    %17 = arith.extui %16 : i1 to i32
    %c0_i32_5 = arith.constant 0 : i32
    %18 = arith.cmpi ne, %17, %c0_i32_5 : i32
    scf.if %18 {
      %38 = tpu.iota {dimensions = array<i32: 0>} : vector<128x512xi32>
      %c0_17 = arith.constant 0 : index
      %c0_18 = arith.constant 0 : index
      %39 = vector.load %arg10[%c0_17, %c0_18] : memref<128x512xi32, #tpu.memory_space<vmem>>, vector<128x512xi32>
      tpu.vector_store %arg10[%c0_17, %c0_18], %38 {strides = array<i32>} : memref<128x512xi32, #tpu.memory_space<vmem>>, vector<128x512xi32>,
    } else {
    }
    %19 = arith.extui %12 : i1 to i32
    %c0_i32_6 = arith.constant 0 : i32
    %20 = arith.cmpi ne, %19, %c0_i32_6 : i32
    scf.if %20 {
      %cst_17 = arith.constant 0.000000e+00 : f32
      %38 = vector.broadcast %cst_17 : f32 to vector<128x128xf32>
      %c0_18 = arith.constant 0 : index
      %c0_19 = arith.constant 0 : index
      %39 = vector.load %arg9[%c0_18, %c0_19] : memref<128x128xf32, #tpu.memory_space<vmem>>, vector<128x128xf32>
      tpu.vector_store %arg9[%c0_18, %c0_19], %38 {strides = array<i32>} : memref<128x128xf32, #tpu.memory_space<vmem>>, vector<128x128xf32>,
    } else {
    }
    %c0 = arith.constant 0 : index
    %c0_7 = arith.constant 0 : index
    %21 = vector.load %arg4[%c0, %c0_7] : memref<1x512xi32, #tpu.memory_space<vmem>>, vector<1x512xi32>
    %c128_i32 = arith.constant 128 : i32
    %22 = arith.muli %1, %c128_i32 : i32
    %23 = vector.broadcast %22 : i32 to vector<1x512xi32>
    %24 = arith.subi %21, %23 : vector<1x512xi32>
    %c0_8 = arith.constant 0 : index
    %c0_9 = arith.constant 0 : index
    %25 = vector.load %arg10[%c0_8, %c0_9] : memref<128x512xi32, #tpu.memory_space<vmem>>, vector<128x512xi32>
    %26 = vector.broadcast %24 : vector<1x512xi32> to vector<128x512xi32>
    %27 = arith.cmpi eq, %25, %26 : vector<128x512xi32>
    %28 = arith.extui %27 : vector<128x512xi1> to vector<128x512xi32>
    %29 = arith.sitofp %28 : vector<128x512xi32> to vector<128x512xf32>
    %30 = arith.truncf %29 : vector<128x512xf32> to vector<128x512xbf16>
    %c0_10 = arith.constant 0 : index
    %c0_11 = arith.constant 0 : index
    %31 = vector.load %arg9[%c0_10, %c0_11] : memref<128x128xf32, #tpu.memory_space<vmem>>, vector<128x128xf32>
    %c0_12 = arith.constant 0 : index
    %c0_13 = arith.constant 0 : index
    %32 = vector.load %arg3[%c0_12, %c0_13] : memref<512x128xbf16, #tpu.memory_space<vmem>>, vector<512x128xbf16>
    %cst = arith.constant dense<0.000000e+00> : vector<128x128xf32>
    %33 = tpu.matmul %30, %32, %cst {dimension_numbers = #tpu.dot_dimension_numbers<[1], [0], [0], [1], [0, 0, 1, 1], [], []>} : vector<128x512xbf16>, vector<512x128xbf16>, vector<128x128xf32> -> vector<128x128xf32>
    %34 = arith.addf %31, %33 : vector<128x128xf32>
    %c0_14 = arith.constant 0 : index
    %c0_15 = arith.constant 0 : index
    %35 = vector.load %arg9[%c0_14, %c0_15] : memref<128x128xf32, #tpu.memory_space<vmem>>, vector<128x128xf32>
    tpu.vector_store %arg9[%c0_14, %c0_15], %34 {strides = array<i32>} : memref<128x128xf32, #tpu.memory_space<vmem>>, vector<128x128xf32>,
    %36 = arith.extui %15 : i1 to i32
    %c0_i32_16 = arith.constant 0 : i32
    %37 = arith.cmpi ne, %36, %c0_i32_16 : i32
    scf.if %37 {
      %c0_17 = arith.constant 0 : index
      %c0_18 = arith.constant 0 : index
      %38 = vector.load %arg9[%c0_17, %c0_18] : memref<128x128xf32, #tpu.memory_space<vmem>>, vector<128x128xf32>
      %c0_19 = arith.constant 0 : index
      %c0_20 = arith.constant 0 : index
      %39 = vector.load %arg5[%c0_19, %c0_20] : memref<128x128xf32, #tpu.memory_space<vmem>>, vector<128x128xf32>
      %cst_21 = arith.constant dense<0.000000e+00> : vector<128x128xf32>
      %40 = tpu.matmul %38, %39, %cst_21 {dimension_numbers = #tpu.dot_dimension_numbers<[1], [0], [0], [1], [0, 0, 1, 1], [], []>} : vector<128x128xf32>, vector<128x128xf32>, vector<128x128xf32> -> vector<128x128xf32>
      %c0_22 = arith.constant 0 : index
      %c0_23 = arith.constant 0 : index
      %41 = vector.load %arg6[%c0_22, %c0_23] : memref<128x1xf32, #tpu.memory_space<vmem>>, vector<128x1xf32>
      %42 = vector.broadcast %41 : vector<128x1xf32> to vector<128x128xf32>
      %43 = arith.mulf %40, %42 : vector<128x128xf32>
      %c0_24 = arith.constant 0 : index
      %c0_25 = arith.constant 0 : index
      %44 = vector.load %arg7[%c0_24, %c0_25] : memref<1x128xf32, #tpu.memory_space<vmem>>, vector<1x128xf32>
      %45 = vector.broadcast %44 : vector<1x128xf32> to vector<128x128xf32>
      %46 = arith.addf %43, %45 : vector<128x128xf32>
      %c0_26 = arith.constant 0 : index
      %c0_27 = arith.constant 0 : index
      %47 = vector.load %arg8[%c0_26, %c0_27] : memref<128x128xf32, #tpu.memory_space<vmem>>, vector<128x128xf32>
      tpu.vector_store %arg8[%c0_26, %c0_27], %46 {strides = array<i32>} : memref<128x128xf32, #tpu.memory_space<vmem>>, vector<128x128xf32>,
    } else {
    }
    return
  }
  func.func @transform_0(%arg0: i32, %arg1: memref<2xi32, #tpu.memory_space<smem>>, %arg2: memref<2xi32, #tpu.memory_space<smem>>) -> (i32, i32) {
    %0 = arith.index_cast %arg0 : i32 to index
    %1 = memref.load %arg2[%0] : memref<2xi32, #tpu.memory_space<smem>>
    %c0_i32 = arith.constant 0 : i32
    %c0_i32_0 = arith.constant 0 : i32
    return %1, %c0_i32 : i32, i32
  }
  func.func @transform_1(%arg0: i32, %arg1: memref<2xi32, #tpu.memory_space<smem>>, %arg2: memref<2xi32, #tpu.memory_space<smem>>) -> (i32, i32) {
    %0 = arith.index_cast %arg0 : i32 to index
    %1 = memref.load %arg2[%0] : memref<2xi32, #tpu.memory_space<smem>>
    %c0_i32 = arith.constant 0 : i32
    %c0_i32_0 = arith.constant 0 : i32
    return %c0_i32, %1 : i32, i32
  }
  func.func @transform_2(%arg0: i32, %arg1: memref<2xi32, #tpu.memory_space<smem>>, %arg2: memref<2xi32, #tpu.memory_space<smem>>) -> (i32, i32) {
    %c0_i32 = arith.constant 0 : i32
    %c0_i32_0 = arith.constant 0 : i32
    %c0_i32_1 = arith.constant 0 : i32
    return %c0_i32, %c0_i32_0 : i32, i32
  }
  func.func @transform_3(%arg0: i32, %arg1: memref<2xi32, #tpu.memory_space<smem>>, %arg2: memref<2xi32, #tpu.memory_space<smem>>) -> (i32, i32) {
    %0 = arith.index_cast %arg0 : i32 to index
    %1 = memref.load %arg1[%0] : memref<2xi32, #tpu.memory_space<smem>>
    %c0_i32 = arith.constant 0 : i32
    %c0_i32_0 = arith.constant 0 : i32
    return %1, %c0_i32 : i32, i32
  }
  func.func @transform_4(%arg0: i32, %arg1: memref<2xi32, #tpu.memory_space<smem>>, %arg2: memref<2xi32, #tpu.memory_space<smem>>) -> (i32, i32) {
    %c0_i32 = arith.constant 0 : i32
    %c0_i32_0 = arith.constant 0 : i32
    %c0_i32_1 = arith.constant 0 : i32
    return %c0_i32, %c0_i32_0 : i32, i32
  }
  func.func @transform_5(%arg0: i32, %arg1: memref<2xi32, #tpu.memory_space<smem>>, %arg2: memref<2xi32, #tpu.memory_space<smem>>) -> (i32, i32) {
    %0 = arith.index_cast %arg0 : i32 to index
    %1 = memref.load %arg1[%0] : memref<2xi32, #tpu.memory_space<smem>>
    %c0_i32 = arith.constant 0 : i32
    %c0_i32_0 = arith.constant 0 : i32
    return %1, %c0_i32 : i32, i32
  }
}

</mosaic_0001>

<bundles_post_ra>
// kernel: custom-call.1
= control target key start
LH: loop header
LB: loop body
LE: loop exit
PB: predicated region body
PF: predicated region fallthrough
CT: control target
= control target key end

     0   :  { %s6_s0 = inlined_call_operand.vmem [shape: u32[2], index: 0, kind: output, shape index: {}]  }

// kernel: circuit_conv.1
= control target key start
LH: loop header
LB: loop body
LE: loop exit
PB: predicated region body
PF: predicated region fallthrough
CT: control target
= control target key end

     0   :  { %s2537_s0 = inlined_call_operand.vmem [shape: s32[2], index: 0, kind: input, shape index: {}]   ;;  %s2538_s2 = inlined_call_operand.vmem [shape: bf16[512,128], index: 2, kind: input, shape index: {}]   ;;  %s2539_s3 = inlined_call_operand.vmem [shape: s32[1,512], index: 3, kind: input, shape index: {}]   ;;  %s2540_s4 = inlined_call_operand.vmem [shape: f32[128,128], index: 4, kind: input, shape index: {}]   ;;  %s2541_s5 = inlined_call_operand.vmem [shape: f32[256,1], index: 5, kind: input, shape index: {}]   ;;  %s2542_s6 = inlined_call_operand.vmem [shape: f32[1,128], index: 6, kind: input, shape index: {}]   ;;  %s2543_s7 = inlined_call_operand.vmem [shape: f32[256,128], index: 7, kind: output, shape index: {}]   ;;  %s2544_s1 = inlined_call_operand.vmem [shape: s32[2], index: 1, kind: input, shape index: {}]  }
   0x1   :  { %s12_s26 = sshll.u32 %s2537_s0, 4  ;;  %s16_s29 = sshll.u32 %s2544_s1, 4  ;;  %s13_s26 = int_to_ptr.vmem [resolvable:$true] %s12_s26  ;;  %s17_s29 = int_to_ptr.vmem [resolvable:$true] %s16_s29 }
   0x2   :  { %s2132_s30 = scalar_lea.vmem %s13_s26, 16  ;;  %p2137_p1 = scmp.lt.s32.totalorder %s13_s26, %s13_s26 }
   0x3   :  { %p2133_p0 = scmp.ne.s32.totalorder %s13_s26, %s2132_s30  ;;  %p2138_p2 = scmp.lt.s32.totalorder %s2132_s30, %s2132_s30 }
   0x5   :  { %p2139_p3 = por %p2138_p2, %p2137_p1 }
   0x7   :  { %p2140_p4 = pnand %p2139_p3, %p2133_p0 }
   0x9   :  { %2143 = shalt.err (!%p2140_p4)  }
   0xa   :  { %s2166_s8 = smov [#allocation5]   ;;  %s2144_s9 = scalar_lea.vmem %s17_s29, 16 }
   0xb   :  { %15 = dma.vmem_to_smem %s13_s26, 16, %s2166_s8, [#allocation4] }
   0xc   :  { %p2145_p5 = scmp.ne.s32.totalorder %s17_s29, %s2144_s9  ;;  %p2149_p6 = scmp.lt.s32.totalorder %s17_s29, %s17_s29 }
   0xd   :  { %p2150_p7 = scmp.lt.s32.totalorder %s2144_s9, %s2144_s9 }
   0xf   :  { %p2151_p8 = por %p2150_p7, %p2149_p6 }
  0x11   :  { %p2152_p9 = pnand %p2151_p8, %p2145_p5 }
  0x13   :  { %2155 = shalt.err (!%p2152_p9)  }
  0x14   :  { %s2167_s0 = smov [#allocation6]  }
  0x15   :  { %19 = dma.vmem_to_smem %s17_s29, 16, %s2167_s0, [#allocation4] }
  0x16   :  { %2160 = dma.done.wait [#allocation4], 32 }
  0x17   :  { %2161 = vsyncadd [#allocation4], 4294967264 }
  0x18   :  { %21 = sfence }
  0x19   :  { %s2217_s1 = smov 0  }
  0x1a LB: > { %s2223_s10 = sadd.s32 4294967295, %s2164_s1   ;;  %p1647_p10 = scmp.ge.s32.totalorder %s2164_s1, 1  ;;  %s2164_s1 = sphi %s2217_s1, %s27_s1  }
  0x1b   : > { %p235_p11 = scmp.lt.s32.totalorder %s2164_s1, 3 }
  0x1d   : > { %p236_p12 = pnand %p1647_p10, %p235_p11 }
  0x1e   : > { %s276_s11 = sld [smem:[#allocation6 + %s2223_s10]] (!%p236_p12)  ;;  %s1655_s15 = sadd.s32 (!%p236_p12), 4294967295, %s2223_s10 }
  0x1f   : > { %239 = sbr.rel (%p236_p12) target bundleno = 634 (0x27a), region = 40  ;;  %s284_s12 = sld [smem:[#allocation6 + %s2223_s10]] (!%p236_p12) }
  0x20   : > { %s291_s13 = sld [smem:[#allocation5 + %s2223_s10]] (!%p236_p12)  ;;  %p310_p13 = scmp.gt.s32.totalorder (!%p236_p12), %s1655_s15, 0 }
  0x21   : > { %s299_s14 = sld [smem:[#allocation5 + %s2223_s10]] (!%p236_p12)  ;;  %s313_s16 = sadd.s32 (!%p236_p12), 1, %s2223_s10 }
  0x22   : > { %s2234_s17 = sld [smem:[#allocation5 + %s2223_s10]] (!%p236_p12)  ;;  %p2236_p0 = scmp.lt.s32.totalorder (!%p236_p12), %s313_s16, 1 }
  0x23   : > { %p317_p5 = scmp.eq.s32.totalorder (!%p236_p12), %s2223_s10, 0  ;;  %p320_p8 = scmp.eq.s32.totalorder (!%p236_p12), %s2223_s10, 1 }
  0x24   : > { %s1648_s19 = sshll.u32 (!%p236_p12), %s276_s11, 6  ;;  %p1656_p11 = scmp.ne.s32.totalorder (!%p236_p12), %s2223_s10, 0 }
  0x25   : > { %s1650_s20 = sshll.u32 (!%p236_p12), %s284_s12, 2  ;;  %p278_p1 = scmp.lt.s32.totalorder (!%p236_p12), %s1648_s19, 63 }
  0x26   : > { %s2549_s15 = smov (!%p310_p13, %s1655_s15), 0  ;;  %p286_p2 = scmp.lt.s32.totalorder %s1650_s20, 3  ;;  %v326_v0 = vlaneseq (!%p1656_p11) }
  0x27   : > { %s1651_s21 = sshll.u32 %s291_s13, 4  ;;  %s1653_s22 = sshll.u32 %s299_s14, 4 }
  0x28   : > { %s2551_s19 = smov (!%p278_p1, %s1648_s19), 63  ;;  %s2553_s20 = smov (!%p286_p2, %s1650_s20), 3 }
  0x29   : > { %s1649_s23 = sshll.u32 %s2551_s19, 2  ;;  %p293_p3 = scmp.lt.s32.totalorder %s1651_s21, 31  ;;  %v327_v1 = vshrl.u32 (!%p1656_p11), %v326_v0, 7 }
  0x2a   : > { %s2245_s26 = scalar_lea.vmem %s2538_s2, %s1649_s23  ;;  %s288_s29 = scalar_lea.vmem %s2539_s3, %s2553_s20 }
  0x2b   : > { %s2555_s21 = smov (!%p293_p3, %s1651_s21), 31  ;;  %p301_p4 = scmp.lt.s32.totalorder %s1653_s22, 31  ;;  %343 = vst [vmem:[#allocation3] sm:$0xff] (!%p1656_p11), %v327_v1  ;;  %344 = vst [vmem:[#allocation3 + $0x8] sm:$0xff] (!%p1656_p11), %v327_v1  ;;  %v328_v2 = vadd.s32 (!%p1656_p11), 8, %v327_v1  ;;  %v329_v3 = vadd.s32 (!%p1656_p11), 16, %v327_v1 }
  0x2c   : > { %s312_s30 = sld [smem:[#allocation5 + %s2549_s15]]  ;;  %s1652_s8 = sshll.u32 %s2555_s21, 3  ;;  %345 = vst [vmem:[#allocation3 + $0x10] sm:$0xff] (!%p1656_p11), %v327_v1  ;;  %346 = vst [vmem:[#allocation3 + $0x18] sm:$0xff] (!%p1656_p11), %v327_v1  ;;  %v330_v4 = vadd.s32 (!%p1656_p11), 24, %v327_v1  ;;  %v331_v5 = vadd.s32 (!%p1656_p11), 32, %v327_v1 }
  0x2d   : > { %s2254_s11 = scalar_lea.vmem %s2541_s5, %s1652_s8  ;;  %s2557_s22 = smov (!%p301_p4, %s1653_s22), 31  ;;  %v332_v6 = vadd.s32 (!%p1656_p11), 40, %v327_v1  ;;  %v333_v7 = vadd.s32 (!%p1656_p11), 48, %v327_v1  ;;  %v334_v8 = vadd.s32 (!%p1656_p11), 56, %v327_v1  ;;  %v335_v9 = vadd.s32 (!%p1656_p11), 64, %v327_v1  ;;  %347 = vst [vmem:[#allocation3 + $0x20] sm:$0xff] (!%p1656_p11), %v328_v2 }
  0x2e   : > { %s2559_s16 = smov (!%p2236_p0, %s313_s16), 1  ;;  %s1654_s12 = sshll.u32 %s2557_s22, 3  ;;  %348 = vst [vmem:[#allocation3 + $0x28] sm:$0xff] (!%p1656_p11), %v328_v2  ;;  %349 = vst [vmem:[#allocation3 + $0x30] sm:$0xff] (!%p1656_p11), %v328_v2  ;;  %v336_v10 = vadd.s32 (!%p1656_p11), 72, %v327_v1  ;;  %v337_v11 = vadd.s32 (!%p1656_p11), 80, %v327_v1 }
  0x2f   : > { %s2262_s19 = scalar_lea.vmem %s2543_s7, %s1654_s12  ;;  %s316_s23 = sld [smem:[#allocation5 + %s2559_s16]]  ;;  %350 = vst [vmem:[#allocation3 + $0x38] sm:$0xff] (!%p1656_p11), %v328_v2  ;;  %351 = vst [vmem:[#allocation3 + $0x40] sm:$0xff] (!%p1656_p11), %v329_v3  ;;  %v338_v12 = vadd.s32 (!%p1656_p11), 88, %v327_v1  ;;  %v339_v13 = vadd.s32 (!%p1656_p11), 96, %v327_v1  ;;  %v340_v14 = vadd.s32 (!%p1656_p11), 104, %v327_v1 }
  0x30   : > { %352 = vst [vmem:[#allocation3 + $0x48] sm:$0xff] (!%p1656_p11), %v329_v3  ;;  %353 = vst [vmem:[#allocation3 + $0x50] sm:$0xff] (!%p1656_p11), %v329_v3  ;;  %v341_v15 = vadd.s32 (!%p1656_p11), 112, %v327_v1  ;;  %v342_v16 = vadd.s32 (!%p1656_p11), 120, %v327_v1 }
  0x31   : > { %325 = sbr.rel (%p1656_p11) target bundleno = 76 (0x4c), region = 44  ;;  %354 = vst [vmem:[#allocation3 + $0x58] sm:$0xff] (!%p1656_p11), %v329_v3  ;;  %355 = vst [vmem:[#allocation3 + $0x60] sm:$0xff] (!%p1656_p11), %v330_v4 }
  0x32   : > { %p318_p6 = scmp.ne.s32.totalorder %s2234_s17, %s312_s30  ;;  %356 = vst [vmem:[#allocation3 + $0x68] sm:$0xff] (!%p1656_p11), %v330_v4  ;;  %357 = vst [vmem:[#allocation3 + $0x70] sm:$0xff] (!%p1656_p11), %v330_v4 }
  0x33   : > { %358 = vst [vmem:[#allocation3 + $0x78] sm:$0xff] (!%p1656_p11), %v330_v4  ;;  %359 = vst [vmem:[#allocation3 + $0x80] sm:$0xff] (!%p1656_p11), %v331_v5 }
  0x34   : > { %p2265_p7 = por %p318_p6, %p317_p5  ;;  %360 = vst [vmem:[#allocation3 + $0x88] sm:$0xff] (!%p1656_p11), %v331_v5  ;;  %361 = vst [vmem:[#allocation3 + $0x90] sm:$0xff] (!%p1656_p11), %v331_v5 }
  0x35   : > { %p321_p9 = scmp.ne.s32.totalorder %s2234_s17, %s316_s23  ;;  %362 = vst [vmem:[#allocation3 + $0x98] sm:$0xff] (!%p1656_p11), %v331_v5  ;;  %363 = vst [vmem:[#allocation3 + $0xa0] sm:$0xff] (!%p1656_p11), %v332_v6 }
  0x36   : > { %364 = vst [vmem:[#allocation3 + $0xa8] sm:$0xff] (!%p1656_p11), %v332_v6  ;;  %365 = vst [vmem:[#allocation3 + $0xb0] sm:$0xff] (!%p1656_p11), %v332_v6 }
  0x37   : > { %p2271_p10 = por %p321_p9, %p320_p8  ;;  %366 = vst [vmem:[#allocation3 + $0xb8] sm:$0xff] (!%p1656_p11), %v332_v6  ;;  %367 = vst [vmem:[#allocation3 + $0xc0] sm:$0xff] (!%p1656_p11), %v333_v7 }
  0x38   : > { %368 = vst [vmem:[#allocation3 + $0xc8] sm:$0xff] %v333_v7  ;;  %369 = vst [vmem:[#allocation3 + $0xd0] sm:$0xff] %v333_v7 }
  0x39   : > { %370 = vst [vmem:[#allocation3 + $0xd8] sm:$0xff] %v333_v7  ;;  %371 = vst [vmem:[#allocation3 + $0xe0] sm:$0xff] %v334_v8 }
  0x3a   : > { %372 = vst [vmem:[#allocation3 + $0xe8] sm:$0xff] %v334_v8  ;;  %373 = vst [vmem:[#allocation3 + $0xf0] sm:$0xff] %v334_v8 }
  0x3b   : > { %374 = vst [vmem:[#allocation3 + $0xf8] sm:$0xff] %v334_v8  ;;  %375 = vst [vmem:[#allocation3 + $0x100] sm:$0xff] %v335_v9 }
  0x3c   : > { %376 = vst [vmem:[#allocation3 + $0x108] sm:$0xff] %v335_v9  ;;  %377 = vst [vmem:[#allocation3 + $0x110] sm:$0xff] %v335_v9 }
  0x3d   : > { %378 = vst [vmem:[#allocation3 + $0x118] sm:$0xff] %v335_v9  ;;  %379 = vst [vmem:[#allocation3 + $0x120] sm:$0xff] %v336_v10 }
  0x3e   : > { %380 = vst [vmem:[#allocation3 + $0x128] sm:$0xff] %v336_v10  ;;  %381 = vst [vmem:[#allocation3 + $0x130] sm:$0xff] %v336_v10 }
  0x3f   : > { %382 = vst [vmem:[#allocation3 + $0x138] sm:$0xff] %v336_v10  ;;  %383 = vst [vmem:[#allocation3 + $0x140] sm:$0xff] %v337_v11 }
  0x40   : > { %384 = vst [vmem:[#allocation3 + $0x148] sm:$0xff] %v337_v11  ;;  %385 = vst [vmem:[#allocation3 + $0x150] sm:$0xff] %v337_v11 }
  0x41   : > { %386 = vst [vmem:[#allocation3 + $0x158] sm:$0xff] %v337_v11  ;;  %387 = vst [vmem:[#allocation3 + $0x160] sm:$0xff] %v338_v12 }
  0x42   : > { %388 = vst [vmem:[#allocation3 + $0x168] sm:$0xff] %v338_v12  ;;  %389 = vst [vmem:[#allocation3 + $0x170] sm:$0xff] %v338_v12 }
  0x43   : > { %390 = vst [vmem:[#allocation3 + $0x178] sm:$0xff] %v338_v12  ;;  %391 = vst [vmem:[#allocation3 + $0x180] sm:$0xff] %v339_v13 }
  0x44   : > { %392 = vst [vmem:[#allocation3 + $0x188] sm:$0xff] %v339_v13  ;;  %393 = vst [vmem:[#allocation3 + $0x190] sm:$0xff] %v339_v13 }
  0x45   : > { %394 = vst [vmem:[#allocation3 + $0x198] sm:$0xff] %v339_v13  ;;  %395 = vst [vmem:[#allocation3 + $0x1a0] sm:$0xff] %v340_v14 }
  0x46   : > { %396 = vst [vmem:[#allocation3 + $0x1a8] sm:$0xff] %v340_v14  ;;  %397 = vst [vmem:[#allocation3 + $0x1b0] sm:$0xff] %v340_v14 }
  0x47   : > { %398 = vst [vmem:[#allocation3 + $0x1b8] sm:$0xff] %v340_v14  ;;  %399 = vst [vmem:[#allocation3 + $0x1c0] sm:$0xff] %v341_v15 }
  0x48   : > { %400 = vst [vmem:[#allocation3 + $0x1c8] sm:$0xff] %v341_v15  ;;  %401 = vst [vmem:[#allocation3 + $0x1d0] sm:$0xff] %v341_v15 }
  0x49   : > { %402 = vst [vmem:[#allocation3 + $0x1d8] sm:$0xff] %v341_v15  ;;  %403 = vst [vmem:[#allocation3 + $0x1e0] sm:$0xff] %v342_v16 }
  0x4a   : > { %404 = vst [vmem:[#allocation3 + $0x1e8] sm:$0xff] %v342_v16  ;;  %405 = vst [vmem:[#allocation3 + $0x1f0] sm:$0xff] %v342_v16 }
  0x4b   : > { %406 = vst [vmem:[#allocation3 + $0x1f8] sm:$0xff] %v342_v16 }
  0x4c PF: > { %409 = sbr.rel (!%p2265_p7) target bundleno = 85 (0x55), region = 48  ;;  %v2168_v17 = vmov (%p2265_p7), 0.0  }
  0x4d   : > { %410 = vst [vmem:[#allocation2] sm:$0xff] (%p2265_p7), %v2168_v17  ;;  %411 = vst [vmem:[#allocation2 + $0x8] sm:$0xff] (%p2265_p7), %v2168_v17 }
  0x4e   : > { %412 = vst [vmem:[#allocation2 + $0x10] sm:$0xff] (%p2265_p7), %v2168_v17  ;;  %413 = vst [vmem:[#allocation2 + $0x18] sm:$0xff] (%p2265_p7), %v2168_v17 }
  0x4f   : > { %414 = vst [vmem:[#allocation2 + $0x20] sm:$0xff] (%p2265_p7), %v2168_v17  ;;  %415 = vst [vmem:[#allocation2 + $0x28] sm:$0xff] (%p2265_p7), %v2168_v17 }
  0x50   : > { %416 = vst [vmem:[#allocation2 + $0x30] sm:$0xff] (%p2265_p7), %v2168_v17  ;;  %417 = vst [vmem:[#allocation2 + $0x38] sm:$0xff] (%p2265_p7), %v2168_v17 }
  0x51   : > { %418 = vst [vmem:[#allocation2 + $0x40] sm:$0xff] (%p2265_p7), %v2168_v17  ;;  %419 = vst [vmem:[#allocation2 + $0x48] sm:$0xff] (%p2265_p7), %v2168_v17 }
  0x52   : > { %420 = vst [vmem:[#allocation2 + $0x50] sm:$0xff] (%p2265_p7), %v2168_v17  ;;  %421 = vst [vmem:[#allocation2 + $0x58] sm:$0xff] (%p2265_p7), %v2168_v17 }
  0x53   : > { %422 = vst [vmem:[#allocation2 + $0x60] sm:$0xff] %v2168_v17  ;;  %423 = vst [vmem:[#allocation2 + $0x68] sm:$0xff] %v2168_v17 }
  0x54   : > { %424 = vst [vmem:[#allocation2 + $0x70] sm:$0xff] %v2168_v17  ;;  %425 = vst [vmem:[#allocation2 + $0x78] sm:$0xff] %v2168_v17 }
  0x55 PF: > { %v2098_v18 = vld [vmem:[%s2245_s26 + $0x40] sm:$0xff]   ;;  %v2102_v22 = vld [vmem:[%s2245_s26 + $0x48] sm:$0xff]   ;;  %v2106_v26 = vld [vmem:[%s2245_s26 + $0x50] sm:$0xff]   ;;  %v494_v39 = vlaneseq  ;;  %s1657_s10 = sshll.u32 %s2234_s17, 7  ;;  %v2169_v11 = vmov 1.0|1.0  }
  0x56   : > { %v2099_v19 = vld [vmem:[%s2245_s26 + $0xc0] sm:$0xff]   ;;  %1821 = vmatprep.subr.bf16.mxu0 %v2098_v18  ;;  %v2103_v23 = vld [vmem:[%s2245_s26 + $0xc8] sm:$0xff]   ;;  %v2107_v27 = vld [vmem:[%s2245_s26 + $0xd0] sm:$0xff]   ;;  %v428_v53 = vstv %s1657_s10 }
  0x57   : > { %v2100_v20 = vld [vmem:[%s2245_s26] sm:$0xff]   ;;  %1885 = vmatprep.subr.bf16.mxu1 %v2099_v19  ;;  %v2104_v24 = vld [vmem:[%s2245_s26 + $0x8] sm:$0xff]   ;;  %v2108_v28 = vld [vmem:[%s2245_s26 + $0x10] sm:$0xff]   ;;  %v495_v44 = vshrl.u32 %v494_v39, 7 }
  0x58   : > { %v2101_v21 = vld [vmem:[%s2245_s26 + $0x80] sm:$0xff]   ;;  %1822 = vmatpush3.bf16.msra.mxu0 %v2100_v20  ;;  %v2105_v25 = vld [vmem:[%s2245_s26 + $0x88] sm:$0xff]   ;;  %v2109_v29 = vld [vmem:[%s2245_s26 + $0x90] sm:$0xff]  }
  0x59   : > { %1886 = vmatpush3.bf16.msra.mxu1 %v2101_v21  ;;  %1823 = vmatprep.subr.bf16.mxu0 %v2102_v22  ;;  %v2110_v30 = vld [vmem:[%s2245_s26 + $0x58] sm:$0xff]   ;;  %v2114_v34 = vld [vmem:[%s2245_s26 + $0x60] sm:$0xff]   ;;  %v2118_v38 = vld [vmem:[%s2245_s26 + $0x68] sm:$0xff]   ;;  %v500_v49 = vsub.s32 1, %v495_v44  ;;  %v508_v51 = vsub.s32 3, %v495_v44  ;;  %v496_v54 = vsub.s32 0, %v495_v44 }
  0x5a   : > { %1887 = vmatprep.subr.bf16.mxu1 %v2103_v23  ;;  %v2111_v31 = vld [vmem:[%s2245_s26 + $0xd8] sm:$0xff]   ;;  %v2115_v35 = vld [vmem:[%s2245_s26 + $0xe0] sm:$0xff]   ;;  %v2119_v40 = vld [vmem:[%s2245_s26 + $0xe8] sm:$0xff]   ;;  %v504_v56 = vsub.s32 2, %v495_v44 }
  0x5b   : > { %v2112_v32 = vld [vmem:[%s2245_s26 + $0x18] sm:$0xff]   ;;  %v2116_v36 = vld [vmem:[%s2245_s26 + $0x20] sm:$0xff]   ;;  %v2120_v41 = vld [vmem:[%s2245_s26 + $0x28] sm:$0xff]  }
  0x5c   : > { %1824 = vmatpush3.bf16.msra.mxu0 %v2104_v24  ;;  %v2113_v33 = vld [vmem:[%s2245_s26 + $0x98] sm:$0xff]   ;;  %v2117_v37 = vld [vmem:[%s2245_s26 + $0xa0] sm:$0xff]   ;;  %v2121_v42 = vld [vmem:[%s2245_s26 + $0xa8] sm:$0xff]  }
  0x5d   : > { %1888 = vmatpush3.bf16.msra.mxu1 %v2105_v25  ;;  %1825 = vmatprep.subr.bf16.mxu0 %v2106_v26  ;;  %v2122_v43 = vld [vmem:[%s2245_s26 + $0x70] sm:$0xff]   ;;  %v2126_v48 = vld [vmem:[%s2245_s26 + $0x78] sm:$0xff]   ;;  %v426_v57 = vld [vmem:[%s288_s29] sm:$0xf] }
  0x5e   : > { %1889 = vmatprep.subr.bf16.mxu1 %v2107_v27  ;;  %v2123_v45 = vld [vmem:[%s2245_s26 + $0xf0] sm:$0xff]   ;;  %v2127_v50 = vld [vmem:[%s2245_s26 + $0xf8] sm:$0xff]   ;;  %v429_v58 = vsub.s32 %v426_v57, %v428_v53  ;;  %v431_v59 = vld [vmem:[#allocation3 + $0x8] sm:$0xff] }
  0x5f   : > { %v2124_v46 = vld [vmem:[%s2245_s26 + $0x30] sm:$0xff]   ;;  %v2128_v52 = vld [vmem:[%s2245_s26 + $0x38] sm:$0xff]   ;;  %v435_v60 = vld [vmem:[#allocation3 + $0x28] sm:$0xff] }
  0x60   : > { %1826 = vmatpush3.bf16.msra.mxu0 %v2108_v28  ;;  %v2125_v47 = vld [vmem:[%s2245_s26 + $0xb0] sm:$0xff]   ;;  %v2129_v55 = vld [vmem:[%s2245_s26 + $0xb8] sm:$0xff]   ;;  %v430_v63 = vld [vmem:[#allocation3] sm:$0xff]  ;;  %v2316_v0 = vrot.slane %v429_v58, %v500_v49  ;;  %v2318_v1 = vrot.slane %v429_v58, %v508_v51  ;;  %v2320_v3 = vrot.slane %v429_v58, %v496_v54  ;;  %v2322_v6 = vrot.slane %v429_v58, %v504_v56 }
  0x61   : > { %1890 = vmatpush3.bf16.msra.mxu1 %v2109_v29  ;;  %1827 = vmatprep.subr.bf16.mxu0 %v2110_v30  ;;  %v433_v61 = vld [vmem:[#allocation3 + $0x18] sm:$0xff]  ;;  %v434_v2 = vld [vmem:[#allocation3 + $0x20] sm:$0xff]  ;;  %v432_v4 = vld [vmem:[#allocation3 + $0x10] sm:$0xff] }
  0x62   : > { %1891 = vmatprep.subr.bf16.mxu1 %v2111_v31  ;;  %v437_v62 = vld [vmem:[#allocation3 + $0x38] sm:$0xff]  ;;  %v436_v5 = vld [vmem:[#allocation3 + $0x30] sm:$0xff]  ;;  %v439_v7 = vld [vmem:[#allocation3 + $0x48] sm:$0xff]  ;;  %vm511_vm0 = vcmp.eq.s32.totalorder %v431_v59, %v2316_v0  ;;  %vm515_vm1 = vcmp.eq.s32.totalorder %v435_v60, %v2316_v0  ;;  %vm513_vm2 = vcmp.eq.s32.totalorder %v433_v61, %v2318_v1  ;;  %vm510_vm5 = vcmp.eq.s32.totalorder %v430_v63, %v2320_v3 }
  0x63   : > { %v443_v8 = vld [vmem:[#allocation3 + $0x68] sm:$0xff]  ;;  %vm517_vm3 = vcmp.eq.s32.totalorder %v437_v62, %v2318_v1  ;;  %v441_v9 = vld [vmem:[#allocation3 + $0x58] sm:$0xff]  ;;  %vm1754_vm4 = vmpackc.low %vm515_vm1, %vm511_vm0  ;;  %vm514_vm6 = vcmp.eq.s32.totalorder %v434_v2, %v2320_v3  ;;  %vm512_vm7 = vcmp.eq.s32.totalorder %v432_v4, %v2322_v6  ;;  %vm516_vm8 = vcmp.eq.s32.totalorder %v436_v5, %v2322_v6 }
  0x64   : > { %1828 = vmatpush3.bf16.msra.mxu0 %v2112_v32  ;;  %v445_v10 = vld [vmem:[#allocation3 + $0x78] sm:$0xff]  ;;  %1755 = vmatprep.mubr.msk.bf16.mxu0 %vm1754_vm4, %v2169_v11  ;;  %vm1786_vm9 = vmpackc.low %vm517_vm3, %vm513_vm2  ;;  %vm519_vm10 = vcmp.eq.s32.totalorder %v439_v7, %v2316_v0  ;;  %vm523_vm11 = vcmp.eq.s32.totalorder %v443_v8, %v2316_v0  ;;  %v438_v12 = vld [vmem:[#allocation3 + $0x40] sm:$0xff]  ;;  %vm521_vm13 = vcmp.eq.s32.totalorder %v441_v9, %v2318_v1 }
  0x65   : > { %1892 = vmatpush3.bf16.msra.mxu1 %v2113_v33  ;;  %1829 = vmatprep.subr.bf16.mxu0 %v2114_v34  ;;  %v442_v13 = vld [vmem:[#allocation3 + $0x60] sm:$0xff]  ;;  %vm1756_vm12 = vmpackc.low %vm514_vm6, %vm510_vm5  ;;  %vm525_vm14 = vcmp.eq.s32.totalorder %v445_v10, %v2318_v1  ;;  %v440_v14 = vld [vmem:[#allocation3 + $0x50] sm:$0xff]  ;;  %vm518_vm1 = vcmp.eq.s32.totalorder %v438_v12, %v2320_v3 }
  0x66   : > { %1893 = vmatprep.subr.bf16.mxu1 %v2115_v35  ;;  %1787 = vmatprep.mubr.msk.bf16.mxu1 %vm1786_vm9, %v2169_v11  ;;  %v444_v15 = vld [vmem:[#allocation3 + $0x70] sm:$0xff]  ;;  %vm1788_vm15 = vmpackc.low %vm516_vm8, %vm512_vm7  ;;  %v447_v16 = vld [vmem:[#allocation3 + $0x88] sm:$0xff]  ;;  %vm522_vm2 = vcmp.eq.s32.totalorder %v442_v13, %v2320_v3  ;;  %vm520_vm4 = vcmp.eq.s32.totalorder %v440_v14, %v2322_v6 }
  0x67   : > { %v451_v17 = vld [vmem:[#allocation3 + $0xa8] sm:$0xff]  ;;  %vm1758_vm0 = vmpackc.low %vm523_vm11, %vm519_vm10  ;;  %v449_v18 = vld [vmem:[#allocation3 + $0x98] sm:$0xff]  ;;  %vm524_vm5 = vcmp.eq.s32.totalorder %v444_v15, %v2322_v6  ;;  %vm527_vm6 = vcmp.eq.s32.totalorder %v447_v16, %v2316_v0 }
  0x68   : > { %1830 = vmatpush3.bf16.msra.mxu0 %v2116_v36  ;;  %v453_v19 = vld [vmem:[#allocation3 + $0xb8] sm:$0xff]  ;;  %vm1790_vm3 = vmpackc.low %vm525_vm14, %vm521_vm13  ;;  %vm531_vm7 = vcmp.eq.s32.totalorder %v451_v17, %v2316_v0  ;;  %vm529_vm9 = vcmp.eq.s32.totalorder %v449_v18, %v2318_v1  ;;  %v446_v20 = vld [vmem:[#allocation3 + $0x80] sm:$0xff] }
  0x69   : > { %1894 = vmatpush3.bf16.msra.mxu1 %v2117_v37  ;;  %1831 = vmatprep.subr.bf16.mxu0 %v2118_v38  ;;  %vm1760_vm8 = vmpackc.low %vm522_vm2, %vm518_vm1  ;;  %vm533_vm10 = vcmp.eq.s32.totalorder %v453_v19, %v2318_v1  ;;  %v450_v21 = vld [vmem:[#allocation3 + $0xa0] sm:$0xff]  ;;  %v448_v22 = vld [vmem:[#allocation3 + $0x90] sm:$0xff]  ;;  %vm526_vm14 = vcmp.eq.s32.totalorder %v446_v20, %v2320_v3 }
  0x6a   : > { %1895 = vmatprep.subr.bf16.mxu1 %v2119_v40  ;;  %vm1792_vm11 = vmpackc.low %vm524_vm5, %vm520_vm4  ;;  %v452_v23 = vld [vmem:[#allocation3 + $0xb0] sm:$0xff]  ;;  %v455_v24 = vld [vmem:[#allocation3 + $0xc8] sm:$0xff] }
  0x6b   : > { %vm1794_vm13 = vmpackc.low %vm533_vm10, %vm529_vm9  ;;  %v459_v25 = vld [vmem:[#allocation3 + $0xe8] sm:$0xff]  ;;  %v457_v26 = vld [vmem:[#allocation3 + $0xd8] sm:$0xff]  ;;  %vm532_vm1 = vcmp.eq.s32.totalorder %v452_v23, %v2322_v6  ;;  %vm535_vm2 = vcmp.eq.s32.totalorder %v455_v24, %v2316_v0 }
  0x6c   : > { %1832 = vmatpush3.bf16.msra.mxu0 %v2120_v41  ;;  %v461_v27 = vld [vmem:[#allocation3 + $0xf8] sm:$0xff]  ;;  %vm537_vm5 = vcmp.eq.s32.totalorder %v457_v26, %v2318_v1  ;;  %v454_v28 = vld [vmem:[#allocation3 + $0xc0] sm:$0xff]  ;;  %v456_v30 = vld [vmem:[#allocation3 + $0xd0] sm:$0xff] }
  0x6d   : > { %1896 = vmatpush3.bf16.msra.mxu1 %v2121_v42  ;;  %1833 = vmatprep.subr.bf16.mxu0 %v2122_v43  ;;  %v458_v29 = vld [vmem:[#allocation3 + $0xe0] sm:$0xff]  ;;  %v460_v31 = vld [vmem:[#allocation3 + $0xf0] sm:$0xff]  ;;  %v463_v32 = vld [vmem:[#allocation3 + $0x108] sm:$0xff]  ;;  %vm534_vm10 = vcmp.eq.s32.totalorder %v454_v28, %v2320_v3 }
  0x6e   : > { %1897 = vmatprep.subr.bf16.mxu1 %v2123_v45  ;;  %v467_v33 = vld [vmem:[#allocation3 + $0x128] sm:$0xff]  ;;  %v465_v34 = vld [vmem:[#allocation3 + $0x118] sm:$0xff]  ;;  %v462_v36 = vld [vmem:[#allocation3 + $0x100] sm:$0xff] }
  0x6f   : > { %v469_v35 = vld [vmem:[#allocation3 + $0x138] sm:$0xff]  ;;  %v466_v37 = vld [vmem:[#allocation3 + $0x120] sm:$0xff]  ;;  %v464_v38 = vld [vmem:[#allocation3 + $0x110] sm:$0xff] }
  0x70   : > { %1834 = vmatpush3.bf16.msra.mxu0 %v2124_v46  ;;  %v468_v39 = vld [vmem:[#allocation3 + $0x130] sm:$0xff]  ;;  %v471_v40 = vld [vmem:[#allocation3 + $0x148] sm:$0xff]  ;;  %v473_v42 = vld [vmem:[#allocation3 + $0x158] sm:$0xff] }
  0x71   : > { %1898 = vmatpush3.bf16.msra.mxu1 %v2125_v47  ;;  %1835 = vmatprep.subr.bf16.mxu0 %v2126_v48  ;;  %v475_v41 = vld [vmem:[#allocation3 + $0x168] sm:$0xff]  ;;  %v477_v43 = vld [vmem:[#allocation3 + $0x178] sm:$0xff]  ;;  %v470_v44 = vld [vmem:[#allocation3 + $0x140] sm:$0xff] }
  0x72   : > { %1899 = vmatprep.subr.bf16.mxu1 %v2127_v50  ;;  %v474_v45 = vld [vmem:[#allocation3 + $0x160] sm:$0xff]  ;;  %v472_v46 = vld [vmem:[#allocation3 + $0x150] sm:$0xff]  ;;  %v479_v48 = vld [vmem:[#allocation3 + $0x188] sm:$0xff] }
  0x73   : > { %v476_v47 = vld [vmem:[#allocation3 + $0x170] sm:$0xff]  ;;  %v483_v49 = vld [vmem:[#allocation3 + $0x1a8] sm:$0xff]  ;;  %v481_v50 = vld [vmem:[#allocation3 + $0x198] sm:$0xff] }
  0x74   : > { %1836 = vmatpush3.bf16.msra.mxu0 %v2128_v52  ;;  %v485_v51 = vld [vmem:[#allocation3 + $0x1b8] sm:$0xff]  ;;  %v478_v52 = vld [vmem:[#allocation3 + $0x180] sm:$0xff]  ;;  %v480_v54 = vld [vmem:[#allocation3 + $0x190] sm:$0xff] }
  0x75   : > { %1900 = vmatpush3.bf16.msra.mxu1 %v2129_v55  ;;  %v482_v53 = vld [vmem:[#allocation3 + $0x1a0] sm:$0xff]  ;;  %v484_v55 = vld [vmem:[#allocation3 + $0x1b0] sm:$0xff]  ;;  %v487_v56 = vld [vmem:[#allocation3 + $0x1c8] sm:$0xff] }
  0x76   : > { %v491_v57 = vld [vmem:[#allocation3 + $0x1e8] sm:$0xff]  ;;  %v489_v58 = vld [vmem:[#allocation3 + $0x1d8] sm:$0xff]  ;;  %v486_v60 = vld [vmem:[#allocation3 + $0x1c0] sm:$0xff] }
  0x77   : > { %1757 = vmatmul.mubr.msk.bf16.vlgmr.msra.gmra.mrb[0].mxu0 %vm1756_vm12, %v2169_v11  ;;  %vm1762_vm12 = vmpackc.low %vm531_vm7, %vm527_vm6  ;;  %vm541_vm6 = vcmp.eq.s32.totalorder %v461_v27, %v2318_v1  ;;  %v493_v59 = vld [vmem:[#allocation3 + $0x1f8] sm:$0xff]  ;;  %v490_v61 = vld [vmem:[#allocation3 + $0x1e0] sm:$0xff] }
  0x78   : > { %1789 = vmatmul.mubr.msk.bf16.vlgmr.msra.gmra.mrb[0].mxu1 %vm1788_vm15, %v2169_v11  ;;  %1759 = vmatprep.mubr.msk.bf16.mxu0 %vm1758_vm0, %v2169_v11  ;;  %vm530_vm15 = vcmp.eq.s32.totalorder %v450_v21, %v2320_v3  ;;  %vm528_vm0 = vcmp.eq.s32.totalorder %v448_v22, %v2322_v6  ;;  %vm1798_vm9 = vmpackc.low %vm541_vm6, %vm537_vm5  ;;  %vm542_vm6 = vcmp.eq.s32.totalorder %v462_v36, %v2320_v3  ;;  %v488_v62 = vld [vmem:[#allocation3 + $0x1d0] sm:$0xff]  ;;  %v735_v15 = vld [vmem:[#allocation2 + $0x8] sm:$0xff] }
  0x79   : > { %1791 = vmatprep.mubr.msk.bf16.mxu1 %vm1790_vm3, %v2169_v11  ;;  %vm539_vm3 = vcmp.eq.s32.totalorder %v459_v25, %v2316_v0  ;;  %vm1764_vm4 = vmpackc.low %vm530_vm15, %vm526_vm14  ;;  %vm543_vm14 = vcmp.eq.s32.totalorder %v463_v32, %v2316_v0  ;;  %vm547_vm15 = vcmp.eq.s32.totalorder %v467_v33, %v2316_v0  ;;  %v492_v63 = vld [vmem:[#allocation3 + $0x1f0] sm:$0xff]  ;;  %v737_v32 = vld [vmem:[#allocation2 + $0x18] sm:$0xff] }
  0x7a   : > { %vm1796_vm7 = vmpackc.low %vm532_vm1, %vm528_vm0  ;;  %vm545_vm1 = vcmp.eq.s32.totalorder %v465_v34, %v2318_v1  ;;  %v736_v27 = vld [vmem:[#allocation2 + $0x10] sm:$0xff] }
  0x7f   : > { %1761 = vmatmul.mubr.msk.bf16.gmra.mrb[4].mxu0 %vm1760_vm8, %v2169_v11  ;;  %vm1766_vm8 = vmpackc.low %vm539_vm3, %vm535_vm2  ;;  %vm549_vm2 = vcmp.eq.s32.totalorder %v469_v35, %v2318_v1 }
  0x80   : > { %1793 = vmatmul.mubr.msk.bf16.gmra.mrb[4].mxu1 %vm1792_vm11, %v2169_v11  ;;  %1763 = vmatprep.mubr.msk.bf16.mxu0 %vm1762_vm12, %v2169_v11  ;;  %vm538_vm11 = vcmp.eq.s32.totalorder %v458_v29, %v2320_v3  ;;  %vm536_vm12 = vcmp.eq.s32.totalorder %v456_v30, %v2322_v6  ;;  %vm1802_vm5 = vmpackc.low %vm549_vm2, %vm545_vm1  ;;  %vm550_vm2 = vcmp.eq.s32.totalorder %v470_v44, %v2320_v3 }
  0x81   : > { %1795 = vmatprep.mubr.msk.bf16.mxu1 %vm1794_vm13, %v2169_v11  ;;  %vm540_vm13 = vcmp.eq.s32.totalorder %v460_v31, %v2322_v6  ;;  %vm1768_vm0 = vmpackc.low %vm538_vm11, %vm534_vm10  ;;  %vm551_vm10 = vcmp.eq.s32.totalorder %v471_v40, %v2316_v0  ;;  %vm555_vm11 = vcmp.eq.s32.totalorder %v475_v41, %v2316_v0 }
  0x82   : > { %vm1800_vm3 = vmpackc.low %vm540_vm13, %vm536_vm12  ;;  %vm553_vm13 = vcmp.eq.s32.totalorder %v473_v42, %v2318_v1 }
  0x87   : > { %1765 = vmatmul.mubr.msk.bf16.gmra.mrb[8].mxu0 %vm1764_vm4, %v2169_v11  ;;  %vm1770_vm4 = vmpackc.low %vm547_vm15, %vm543_vm14  ;;  %vm557_vm14 = vcmp.eq.s32.totalorder %v477_v43, %v2318_v1 }
  0x88   : > { %1797 = vmatmul.mubr.msk.bf16.gmra.mrb[8].mxu1 %vm1796_vm7, %v2169_v11  ;;  %1767 = vmatprep.mubr.msk.bf16.mxu0 %vm1766_vm8, %v2169_v11  ;;  %vm546_vm7 = vcmp.eq.s32.totalorder %v466_v37, %v2320_v3  ;;  %vm544_vm8 = vcmp.eq.s32.totalorder %v464_v38, %v2322_v6  ;;  %vm1806_vm1 = vmpackc.low %vm557_vm14, %vm553_vm13  ;;  %vm558_vm14 = vcmp.eq.s32.totalorder %v478_v52, %v2320_v3 }
  0x89   : > { %1799 = vmatprep.mubr.msk.bf16.mxu1 %vm1798_vm9, %v2169_v11  ;;  %vm548_vm9 = vcmp.eq.s32.totalorder %v468_v39, %v2322_v6  ;;  %vm1772_vm12 = vmpackc.low %vm546_vm7, %vm542_vm6  ;;  %vm559_vm6 = vcmp.eq.s32.totalorder %v479_v48, %v2316_v0  ;;  %vm563_vm7 = vcmp.eq.s32.totalorder %v483_v49, %v2316_v0 }
  0x8a   : > { %vm1804_vm15 = vmpackc.low %vm548_vm9, %vm544_vm8  ;;  %vm561_vm9 = vcmp.eq.s32.totalorder %v481_v50, %v2318_v1  ;;  %v739_v50 = vld [vmem:[#allocation2 + $0x28] sm:$0xff] }
  0x8f   : > { %1769 = vmatmul.mubr.msk.bf16.gmra.mrb[12].mxu0 %vm1768_vm0, %v2169_v11  ;;  %vm1774_vm0 = vmpackc.low %vm555_vm11, %vm551_vm10  ;;  %vm565_vm10 = vcmp.eq.s32.totalorder %v485_v51, %v2318_v1 }
  0x90   : > { %1801 = vmatmul.mubr.msk.bf16.gmra.mrb[12].mxu1 %vm1800_vm3, %v2169_v11  ;;  %1771 = vmatprep.mubr.msk.bf16.mxu0 %vm1770_vm4, %v2169_v11  ;;  %vm554_vm3 = vcmp.eq.s32.totalorder %v474_v45, %v2320_v3  ;;  %vm552_vm4 = vcmp.eq.s32.totalorder %v472_v46, %v2322_v6  ;;  %vm1810_vm13 = vmpackc.low %vm565_vm10, %vm561_vm9  ;;  %vm566_vm10 = vcmp.eq.s32.totalorder %v486_v60, %v2320_v3  ;;  %v738_v45 = vld [vmem:[#allocation2 + $0x20] sm:$0xff] }
  0x91   : > { %1803 = vmatprep.mubr.msk.bf16.mxu1 %vm1802_vm5, %v2169_v11  ;;  %vm556_vm5 = vcmp.eq.s32.totalorder %v476_v47, %v2322_v6  ;;  %vm1776_vm8 = vmpackc.low %vm554_vm3, %vm550_vm2  ;;  %vm567_vm2 = vcmp.eq.s32.totalorder %v487_v56, %v2316_v0  ;;  %vm571_vm3 = vcmp.eq.s32.totalorder %v491_v57, %v2316_v0 }
  0x92   : > { %vm1808_vm11 = vmpackc.low %vm556_vm5, %vm552_vm4  ;;  %vm569_vm5 = vcmp.eq.s32.totalorder %v489_v58, %v2318_v1 }
  0x97   : > { %1773 = vmatmul.mubr.msk.bf16.gmra.mrb[16].mxu0 %vm1772_vm12, %v2169_v11  ;;  %vm1778_vm12 = vmpackc.low %vm563_vm7, %vm559_vm6  ;;  %vm573_vm6 = vcmp.eq.s32.totalorder %v493_v59, %v2318_v1 }
  0x98   : > { %1805 = vmatmul.mubr.msk.bf16.gmra.mrb[16].mxu1 %vm1804_vm15, %v2169_v11  ;;  %1775 = vmatprep.mubr.msk.bf16.mxu0 %vm1774_vm0, %v2169_v11  ;;  %vm562_vm15 = vcmp.eq.s32.totalorder %v482_v53, %v2320_v3  ;;  %vm560_vm0 = vcmp.eq.s32.totalorder %v480_v54, %v2322_v6  ;;  %vm1814_vm9 = vmpackc.low %vm573_vm6, %vm569_vm5 }
  0x99   : > { %1807 = vmatprep.mubr.msk.bf16.mxu1 %vm1806_vm1, %v2169_v11  ;;  %vm564_vm1 = vcmp.eq.s32.totalorder %v484_v55, %v2322_v6  ;;  %vm1780_vm4 = vmpackc.low %vm562_vm15, %vm558_vm14 }
  0x9a   : > { %vm1812_vm7 = vmpackc.low %vm564_vm1, %vm560_vm0 }
  0x9f   : > { %1777 = vmatmul.mubr.msk.bf16.gmra.mrb[20].mxu0 %vm1776_vm8, %v2169_v11  ;;  %vm1782_vm8 = vmpackc.low %vm571_vm3, %vm567_vm2 }
  0xa0   : > { %1809 = vmatmul.mubr.msk.bf16.gmra.mrb[20].mxu1 %vm1808_vm11, %v2169_v11  ;;  %1779 = vmatprep.mubr.msk.bf16.mxu0 %vm1778_vm12, %v2169_v11  ;;  %vm570_vm11 = vcmp.eq.s32.totalorder %v490_v61, %v2320_v3  ;;  %vm568_vm12 = vcmp.eq.s32.totalorder %v488_v62, %v2322_v6  ;;  %v734_v3 = vld [vmem:[#allocation2] sm:$0xff] }
  0xa1   : > { %1811 = vmatprep.mubr.msk.bf16.mxu1 %vm1810_vm13, %v2169_v11  ;;  %vm572_vm13 = vcmp.eq.s32.totalorder %v492_v63, %v2322_v6  ;;  %vm1784_vm14 = vmpackc.low %vm570_vm11, %vm566_vm10  ;;  %v740_v63 = vld [vmem:[#allocation2 + $0x30] sm:$0xff] }
  0xa2   : > { %vm1816_vm15 = vmpackc.low %vm572_vm13, %vm568_vm12 }
  0xa7   : > { %1781 = vmatmul.mubr.msk.bf16.gmra.mrb[24].mxu0 %vm1780_vm4, %v2169_v11 }
  0xa8   : > { %1813 = vmatmul.mubr.msk.bf16.gmra.mrb[24].mxu1 %vm1812_vm7, %v2169_v11  ;;  %1783 = vmatprep.mubr.msk.bf16.mxu0 %vm1782_vm8, %v2169_v11 }
  0xa9   : > { %1815 = vmatprep.mubr.msk.bf16.mxu1 %vm1814_vm9, %v2169_v11 }
  0xaf   : > { %1785 = vmatmul.mubr.msk.bf16.gmra.mrb[28].mxu0 %vm1784_vm14, %v2169_v11 }
  0xb0   : > { %1817 = vmatmul.mubr.msk.bf16.gmra.mrb[28].mxu1 %vm1816_vm15, %v2169_v11 }
 0x14a   : > { %v1837_v0 = vpop.f32.mrb[0].mxu0 }
 0x14b   : > { %v1901_v1 = vpop.f32.mrb[0].mxu1  ;;  %v1838_v2 = vpop.f32.mrb[1].mxu0 }
 0x14c   : > { %v1839_v4 = vadd.f32 %v1838_v2, %v1837_v0  ;;  %v1902_v5 = vpop.f32.mrb[1].mxu1  ;;  %v1840_v7 = vpop.f32.mrb[2].mxu0 }
 0x14d   : > { %v1903_v8 = vadd.f32 %v1902_v5, %v1901_v1  ;;  %v1904_v9 = vpop.f32.mrb[2].mxu1  ;;  %v1841_v10 = vpop.f32.mrb[3].mxu0  ;;  %v741_v5 = vld [vmem:[#allocation2 + $0x38] sm:$0xff] }
 0x14e   : > { %v1842_v12 = vadd.f32 %v1841_v10, %v1840_v7  ;;  %v1905_v13 = vpop.f32.mrb[3].mxu1 }
 0x14f   : > { %v1138_v14 = vadd.f32 %v1903_v8, %v1839_v4  ;;  %v1906_v6 = vadd.f32 %v1905_v13, %v1904_v9 }
 0x151   : > { %v1200_v16 = vadd.f32 %v1138_v14, %v734_v3  ;;  %v1141_v17 = vadd.f32 %v1906_v6, %v1842_v12 }
 0x152   : > { %v1843_v18 = vpop.f32.mrb[4].mxu0 }
 0x153   : > { %1216 = vst [vmem:[#allocation2] sm:$0xff] %v1200_v16  ;;  %v1201_v11 = vadd.f32 %v1141_v17, %v735_v15  ;;  %v1907_v19 = vpop.f32.mrb[4].mxu1  ;;  %v1844_v20 = vpop.f32.mrb[5].mxu0 }
 0x154   : > { %v1845_v21 = vadd.f32 %v1844_v20, %v1843_v18  ;;  %v1908_v22 = vpop.f32.mrb[5].mxu1  ;;  %v1846_v23 = vpop.f32.mrb[6].mxu0  ;;  %v742_v18 = vld [vmem:[#allocation2 + $0x40] sm:$0xff] }
 0x155   : > { %1217 = vst [vmem:[#allocation2 + $0x8] sm:$0xff] %v1201_v11  ;;  %v1909_v24 = vadd.f32 %v1908_v22, %v1907_v19  ;;  %v1910_v25 = vpop.f32.mrb[6].mxu1  ;;  %v1847_v26 = vpop.f32.mrb[7].mxu0  ;;  %v743_v22 = vld [vmem:[#allocation2 + $0x48] sm:$0xff] }
 0x156   : > { %v1848_v28 = vadd.f32 %v1847_v26, %v1846_v23  ;;  %v1911_v29 = vpop.f32.mrb[7].mxu1 }
 0x157   : > { %v1146_v30 = vadd.f32 %v1909_v24, %v1845_v21  ;;  %v1912_v31 = vadd.f32 %v1911_v29, %v1910_v25 }
 0x159   : > { %v1202_v33 = vadd.f32 %v1146_v30, %v736_v27  ;;  %v1149_v34 = vadd.f32 %v1912_v31, %v1848_v28 }
 0x15a   : > { %v1849_v35 = vpop.f32.mrb[8].mxu0 }
 0x15b   : > { %1218 = vst [vmem:[#allocation2 + $0x10] sm:$0xff] %v1202_v33  ;;  %v1203_v36 = vadd.f32 %v1149_v34, %v737_v32  ;;  %v1913_v37 = vpop.f32.mrb[8].mxu1  ;;  %v1850_v38 = vpop.f32.mrb[9].mxu0 }
 0x15c   : > { %v1851_v39 = vadd.f32 %v1850_v38, %v1849_v35  ;;  %v1914_v40 = vpop.f32.mrb[9].mxu1  ;;  %v1852_v41 = vpop.f32.mrb[10].mxu0  ;;  %v744_v35 = vld [vmem:[#allocation2 + $0x50] sm:$0xff] }
 0x15d   : > { %1219 = vst [vmem:[#allocation2 + $0x18] sm:$0xff] %v1203_v36  ;;  %v1915_v42 = vadd.f32 %v1914_v40, %v1913_v37  ;;  %v1916_v43 = vpop.f32.mrb[10].mxu1  ;;  %v1853_v44 = vpop.f32.mrb[11].mxu0  ;;  %v745_v40 = vld [vmem:[#allocation2 + $0x58] sm:$0xff] }
 0x15e   : > { %v1854_v46 = vadd.f32 %v1853_v44, %v1852_v41  ;;  %v1917_v47 = vpop.f32.mrb[11].mxu1 }
 0x15f   : > { %v1154_v48 = vadd.f32 %v1915_v42, %v1851_v39  ;;  %v1918_v49 = vadd.f32 %v1917_v47, %v1916_v43 }
 0x161   : > { %v1204_v51 = vadd.f32 %v1154_v48, %v738_v45  ;;  %v1157_v52 = vadd.f32 %v1918_v49, %v1854_v46 }
 0x162   : > { %v1855_v53 = vpop.f32.mrb[12].mxu0 }
 0x163   : > { %1220 = vst [vmem:[#allocation2 + $0x20] sm:$0xff] %v1204_v51  ;;  %v1205_v54 = vadd.f32 %v1157_v52, %v739_v50  ;;  %v1919_v55 = vpop.f32.mrb[12].mxu1  ;;  %v1856_v56 = vpop.f32.mrb[13].mxu0 }
 0x164   : > { %v1857_v57 = vadd.f32 %v1856_v56, %v1855_v53  ;;  %v1920_v58 = vpop.f32.mrb[13].mxu1  ;;  %v1858_v59 = vpop.f32.mrb[14].mxu0  ;;  %v746_v53 = vld [vmem:[#allocation2 + $0x60] sm:$0xff] }
 0x165   : > { %1221 = vst [vmem:[#allocation2 + $0x28] sm:$0xff] %v1205_v54  ;;  %v1921_v60 = vadd.f32 %v1920_v58, %v1919_v55  ;;  %v1922_v61 = vpop.f32.mrb[14].mxu1  ;;  %v1859_v62 = vpop.f32.mrb[15].mxu0  ;;  %v747_v58 = vld [vmem:[#allocation2 + $0x68] sm:$0xff] }
 0x166   : > { %v1860_v0 = vadd.f32 %v1859_v62, %v1858_v59  ;;  %v1923_v1 = vpop.f32.mrb[15].mxu1 }
 0x167   : > { %v1162_v2 = vadd.f32 %v1921_v60, %v1857_v57  ;;  %v1924_v4 = vadd.f32 %v1923_v1, %v1922_v61 }
 0x169   : > { %v1206_v7 = vadd.f32 %v1162_v2, %v740_v63  ;;  %v1165_v8 = vadd.f32 %v1924_v4, %v1860_v0 }
 0x16a   : > { %v1861_v9 = vpop.f32.mrb[16].mxu0 }
 0x16b   : > { %1222 = vst [vmem:[#allocation2 + $0x30] sm:$0xff] %v1206_v7  ;;  %v1207_v10 = vadd.f32 %v1165_v8, %v741_v5  ;;  %v1925_v3 = vpop.f32.mrb[16].mxu1  ;;  %v1862_v12 = vpop.f32.mrb[17].mxu0 }
 0x16c   : > { %v1863_v13 = vadd.f32 %v1862_v12, %v1861_v9  ;;  %v1926_v14 = vpop.f32.mrb[17].mxu1  ;;  %v1864_v6 = vpop.f32.mrb[18].mxu0  ;;  %v748_v9 = vld [vmem:[#allocation2 + $0x70] sm:$0xff] }
 0x16d   : > { %1223 = vst [vmem:[#allocation2 + $0x38] sm:$0xff] %v1207_v10  ;;  %v1927_v15 = vadd.f32 %v1926_v14, %v1925_v3  ;;  %v1928_v16 = vpop.f32.mrb[18].mxu1  ;;  %v1865_v17 = vpop.f32.mrb[19].mxu0  ;;  %v749_v14 = vld [vmem:[#allocation2 + $0x78] sm:$0xff] }
 0x16e   : > { %v1866_v11 = vadd.f32 %v1865_v17, %v1864_v6  ;;  %v1929_v19 = vpop.f32.mrb[19].mxu1  ;;  %v1251_v17 = vld [vmem:[%s2540_s4] sm:$0xff] (%p2271_p10) }
 0x16f   : > { %v1170_v20 = vadd.f32 %v1927_v15, %v1863_v13  ;;  %v1930_v21 = vadd.f32 %v1929_v19, %v1928_v16 }
 0x171   : > { %v1208_v23 = vadd.f32 %v1170_v20, %v742_v18  ;;  %v1173_v24 = vadd.f32 %v1930_v21, %v1866_v11  ;;  %v1252_v18 = vld [vmem:[%s2540_s4 + $0x8] sm:$0xff] (%p2271_p10)  ;;  %v1253_v11 = vld [vmem:[%s2540_s4 + $0x10] sm:$0xff] (%p2271_p10)  ;;  %v1254_v20 = vld [vmem:[%s2540_s4 + $0x18] sm:$0xff] (%p2271_p10)  ;;  %v2170_v21 = vmov (%p2271_p10), 0  }
 0x172   : > { %v1867_v25 = vpop.f32.mrb[20].mxu0  ;;  %v2037_v19 = vpack.c.bf16 (%p2271_p10), %v1252_v18, %v1251_v17  ;;  %2131 = vset.pattern.permute.xlu1 (%p2271_p10), %v2170_v21  ;;  %2130 = vset.pattern.permute.xlu0 (%p2271_p10), %v2170_v21 }
 0x173   : > { %1224 = vst [vmem:[#allocation2 + $0x40] sm:$0xff] %v1208_v23  ;;  %v1209_v26 = vadd.f32 %v1173_v24, %v743_v22  ;;  %v1931_v27 = vpop.f32.mrb[20].mxu1  ;;  %v1868_v28 = vpop.f32.mrb[21].mxu0  ;;  %v2041_v22 = vpack.c.bf16 (%p2271_p10), %v1254_v20, %v1253_v11  ;;  %v1255_v23 = vld [vmem:[%s2540_s4 + $0x20] sm:$0xff] (%p2271_p10)  ;;  %v1256_v24 = vld [vmem:[%s2540_s4 + $0x28] sm:$0xff] (%p2271_p10) }
 0x174   : > { %v1869_v29 = vadd.f32 %v1868_v28, %v1867_v25  ;;  %v1932_v30 = vpop.f32.mrb[21].mxu1  ;;  %v1870_v31 = vpop.f32.mrb[22].mxu0  ;;  %2038 = vmatprep.subr.bf16.mxu0 (%p2271_p10), %v2037_v19  ;;  %2069 = vmatprep.subr.bf16.mxu1 (%p2271_p10), %v2037_v19  ;;  %v2045_v25 = vpack.c.bf16 (%p2271_p10), %v1256_v24, %v1255_v23  ;;  %v1257_v28 = vld [vmem:[%s2540_s4 + $0x30] sm:$0xff] (%p2271_p10) }
 0x175   : > { %1225 = vst [vmem:[#allocation2 + $0x48] sm:$0xff] %v1209_v26  ;;  %v1933_v32 = vadd.f32 %v1932_v30, %v1931_v27  ;;  %v1934_v33 = vpop.f32.mrb[22].mxu1  ;;  %v1871_v34 = vpop.f32.mrb[23].mxu0  ;;  %2040 = vmatpush3.bf16.msra.mxu0 (%p2271_p10), %v2037_v19  ;;  %2077 = vmatpush3.bf16.msra.mxu1 (%p2271_p10), %v2037_v19  ;;  %v1235_v26 = vld [vmem:[#allocation2] sm:$0xff] (%p2271_p10) }
 0x176   : > { %v1872_v36 = vadd.f32 %v1871_v34, %v1870_v31  ;;  %v1935_v37 = vpop.f32.mrb[23].mxu1  ;;  %2042 = vmatprep.subr.bf16.mxu0 (%p2271_p10), %v2041_v22  ;;  %2070 = vmatprep.subr.bf16.mxu1 (%p2271_p10), %v2041_v22  ;;  %v1259_v31 = vld [vmem:[%s2540_s4 + $0x40] sm:$0xff] (%p2271_p10) }
 0x177   : > { %v1178_v38 = vadd.f32 %v1933_v32, %v1869_v29  ;;  %v1936_v39 = vadd.f32 %v1935_v37, %v1934_v33  ;;  %v1258_v29 = vld [vmem:[%s2540_s4 + $0x38] sm:$0xff] (%p2271_p10)  ;;  %2013 = vmatprep.mubr.f32.mxu0 (%p2271_p10), %v1235_v26  ;;  %v1260_v32 = vld [vmem:[%s2540_s4 + $0x48] sm:$0xff] (%p2271_p10)  ;;  %v1414_v33 = vld [vmem:[%s2254_s11 + $0x10] sm:$0xff] (%p2271_p10) }
 0x178   : > { %v2049_v30 = vpack.c.bf16 (%p2271_p10), %v1258_v29, %v1257_v28  ;;  %1440 = vperm.xlu1 (%p2271_p10), %2131, %v1414_v33   ;;  %v1412_v34 = vld [vmem:[%s2254_s11] sm:$0xff] (%p2271_p10)  ;;  %v1261_v37 = vld [vmem:[%s2540_s4 + $0x50] sm:$0xff] (%p2271_p10) }
 0x179   : > { %v1210_v41 = vadd.f32 %v1178_v38, %v744_v35  ;;  %v1181_v42 = vadd.f32 %v1936_v39, %v1872_v36  ;;  %2044 = vmatpush3.bf16.msra.mxu0 (%p2271_p10), %v2041_v22  ;;  %2078 = vmatpush3.bf16.msra.mxu1 (%p2271_p10), %v2041_v22  ;;  %v1415_v35 = vld [vmem:[%s2254_s11 + $0x18] sm:$0xff] (%p2271_p10)  ;;  %v2053_v36 = vpack.c.bf16 (%p2271_p10), %v1260_v32, %v1259_v31  ;;  %v1413_v39 = vld [vmem:[%s2254_s11 + $0x8] sm:$0xff] (%p2271_p10)  ;;  %v2499_v22 = vld [vmem:[%s2542_s6] ss:$0 sm:$0xff] (%p2271_p10) }
 0x17a   : > { %v1873_v43 = vpop.f32.mrb[24].mxu0  ;;  %v1243_v27 = vld [vmem:[#allocation2 + $0x40] sm:$0xff] (%p2271_p10)  ;;  %2046 = vmatprep.subr.bf16.mxu0 (%p2271_p10), %v2045_v25  ;;  %2071 = vmatprep.subr.bf16.mxu1 (%p2271_p10), %v2045_v25  ;;  %v1262_v38 = vld [vmem:[%s2540_s4 + $0x58] sm:$0xff] (%p2271_p10) }
 0x17b   : > { %1226 = vst [vmem:[#allocation2 + $0x50] sm:$0xff] %v1210_v41  ;;  %v1211_v44 = vadd.f32 %v1181_v42, %v745_v40  ;;  %v1937_v45 = vpop.f32.mrb[24].mxu1  ;;  %v1874_v46 = vpop.f32.mrb[25].mxu0  ;;  %2025 = vmatprep.mubr.f32.mxu1 (%p2271_p10), %v1243_v27  ;;  %1430 = vperm.xlu0 (%p2271_p10), %2130, %v1412_v34   ;;  %v1417_v40 = vld [vmem:[%s2254_s11 + $0x28] sm:$0xff] (%p2271_p10)  ;;  %v2057_v41 = vpack.c.bf16 (%p2271_p10), %v1262_v38, %v1261_v37  ;;  %v1263_v42 = vld [vmem:[%s2540_s4 + $0x60] sm:$0xff] (%p2271_p10) }
 0x17c   : > { %v1875_v47 = vadd.f32 %v1874_v46, %v1873_v43  ;;  %v1938_v48 = vpop.f32.mrb[25].mxu1  ;;  %v1876_v49 = vpop.f32.mrb[26].mxu0  ;;  %1445 = vperm.xlu1 (%p2271_p10), %2131, %v1415_v35   ;;  %v1264_v43 = vld [vmem:[%s2540_s4 + $0x68] sm:$0xff] (%p2271_p10) }
 0x17d   : > { %1227 = vst [vmem:[#allocation2 + $0x58] sm:$0xff] %v1211_v44  ;;  %v1939_v50 = vadd.f32 %v1938_v48, %v1937_v45  ;;  %v1940_v51 = vpop.f32.mrb[26].mxu1  ;;  %v1877_v52 = vpop.f32.mrb[27].mxu0  ;;  %2048 = vmatpush3.bf16.msra.mxu0 (%p2271_p10), %v2045_v25  ;;  %2079 = vmatpush3.bf16.msra.mxu1 (%p2271_p10), %v2045_v25  ;;  %v1416_v44 = vld [vmem:[%s2254_s11 + $0x20] sm:$0xff] (%p2271_p10)  ;;  %v1419_v45 = vld [vmem:[%s2254_s11 + $0x38] sm:$0xff] (%p2271_p10)  ;;  %v2061_v46 = vpack.c.bf16 (%p2271_p10), %v1264_v43, %v1263_v42 }
 0x17e   : > { %v1878_v54 = vadd.f32 %v1877_v52, %v1876_v49  ;;  %v1941_v55 = vpop.f32.mrb[27].mxu1  ;;  %2050 = vmatprep.subr.bf16.mxu0 (%p2271_p10), %v2049_v30  ;;  %2072 = vmatprep.subr.bf16.mxu1 (%p2271_p10), %v2049_v30  ;;  %v1266_v48 = vld [vmem:[%s2540_s4 + $0x78] sm:$0xff] (%p2271_p10)  ;;  %v1418_v49 = vld [vmem:[%s2254_s11 + $0x30] sm:$0xff] (%p2271_p10)  ;;  %v1420_v52 = vld [vmem:[%s2254_s11 + $0x40] sm:$0xff] (%p2271_p10) }
 0x17f   : > { %v1186_v56 = vadd.f32 %v1939_v50, %v1875_v47  ;;  %v1942_v57 = vadd.f32 %v1941_v55, %v1940_v51  ;;  %1435 = vperm.xlu0 (%p2271_p10), %2130, %v1413_v39   ;;  %v1265_v47 = vld [vmem:[%s2540_s4 + $0x70] sm:$0xff] (%p2271_p10)  ;;  %v1421_v50 = vld [vmem:[%s2254_s11 + $0x48] sm:$0xff] (%p2271_p10) }
 0x180   : > { %1455 = vperm.xlu1 (%p2271_p10), %2131, %v1417_v40   ;;  %v2065_v51 = vpack.c.bf16 (%p2271_p10), %v1266_v48, %v1265_v47  ;;  %v1236_v55 = vld [vmem:[#allocation2 + $0x8] sm:$0xff] (%p2271_p10) }
 0x181   : > { %v1212_v59 = vadd.f32 %v1186_v56, %v746_v53  ;;  %v1189_v60 = vadd.f32 %v1942_v57, %v1878_v54  ;;  %2052 = vmatpush3.bf16.msra.mxu0 (%p2271_p10), %v2049_v30  ;;  %2080 = vmatpush3.bf16.msra.mxu1 (%p2271_p10), %v2049_v30  ;;  %v1423_v53 = vld [vmem:[%s2254_s11 + $0x58] sm:$0xff] (%p2271_p10)  ;;  %v1422_v54 = vld [vmem:[%s2254_s11 + $0x50] sm:$0xff] (%p2271_p10)  ;;  %v1244_v56 = vld [vmem:[#allocation2 + $0x48] sm:$0xff] (%p2271_p10) }
 0x182   : > { %v1879_v61 = vpop.f32.mrb[28].mxu0  ;;  %2054 = vmatprep.subr.bf16.mxu0 (%p2271_p10), %v2053_v36  ;;  %2073 = vmatprep.subr.bf16.mxu1 (%p2271_p10), %v2053_v36  ;;  %v1237_v57 = vld [vmem:[#allocation2 + $0x10] sm:$0xff] (%p2271_p10) }
 0x183   : > { %1228 = vst [vmem:[#allocation2 + $0x60] sm:$0xff] %v1212_v59  ;;  %v1213_v62 = vadd.f32 %v1189_v60, %v747_v58  ;;  %v1943_v63 = vpop.f32.mrb[28].mxu1  ;;  %v1880_v0 = vpop.f32.mrb[29].mxu0  ;;  %1450 = vperm.xlu0 (%p2271_p10), %2130, %v1416_v44   ;;  %v1245_v58 = vld [vmem:[#allocation2 + $0x50] sm:$0xff] (%p2271_p10)  ;;  %v1425_v59 = vld [vmem:[%s2254_s11 + $0x68] sm:$0xff] (%p2271_p10)  ;;  %v1424_v60 = vld [vmem:[%s2254_s11 + $0x60] sm:$0xff] (%p2271_p10) }
 0x184   : > { %v1881_v1 = vadd.f32 %v1880_v0, %v1879_v61  ;;  %v1944_v2 = vpop.f32.mrb[29].mxu1  ;;  %v1882_v4 = vpop.f32.mrb[30].mxu0  ;;  %1465 = vperm.xlu1 (%p2271_p10), %2131, %v1419_v45   ;;  %v1238_v61 = vld [vmem:[#allocation2 + $0x18] sm:$0xff] (%p2271_p10) }
 0x185   : > { %1229 = vst [vmem:[#allocation2 + $0x68] sm:$0xff] %v1213_v62  ;;  %v1945_v5 = vadd.f32 %v1944_v2, %v1943_v63  ;;  %v1946_v7 = vpop.f32.mrb[30].mxu1  ;;  %v1883_v8 = vpop.f32.mrb[31].mxu0  ;;  %2056 = vmatpush3.bf16.msra.mxu0 (%p2271_p10), %v2053_v36  ;;  %2081 = vmatpush3.bf16.msra.mxu1 (%p2271_p10), %v2053_v36  ;;  %v1246_v62 = vld [vmem:[#allocation2 + $0x58] sm:$0xff] (%p2271_p10)  ;;  %v1239_v63 = vld [vmem:[#allocation2 + $0x20] sm:$0xff] (%p2271_p10)  ;;  %v1426_v2 = vld [vmem:[%s2254_s11 + $0x70] sm:$0xff] (%p2271_p10) }
 0x186   : > { %v1884_v10 = vadd.f32 %v1883_v8, %v1882_v4  ;;  %v1947_v3 = vpop.f32.mrb[31].mxu1  ;;  %2058 = vmatprep.subr.bf16.mxu0 (%p2271_p10), %v2057_v41  ;;  %2074 = vmatprep.subr.bf16.mxu1 (%p2271_p10), %v2057_v41  ;;  %v1240_v4 = vld [vmem:[#allocation2 + $0x28] sm:$0xff] (%p2271_p10) }
 0x187   : > { %v1194_v12 = vadd.f32 %v1945_v5, %v1881_v1  ;;  %v1948_v13 = vadd.f32 %v1947_v3, %v1946_v7  ;;  %1234 = sbr.rel (!%p2271_p10) target bundleno = 634 (0x27a), region = 52  ;;  %1460 = vperm.xlu0 (%p2271_p10), %2130, %v1418_v49   ;;  %v1427_v1 = vld [vmem:[%s2254_s11 + $0x78] sm:$0xff] (%p2271_p10)  ;;  %v1241_v7 = vld [vmem:[#allocation2 + $0x30] sm:$0xff] (%p2271_p10) }
 0x188   : > { %1475 = vperm.xlu1 (%p2271_p10), %2131, %v1421_v50  }
 0x189   : > { %v1214_v6 = vadd.f32 %v1194_v12, %v748_v9  ;;  %v1197_v15 = vadd.f32 %v1948_v13, %v1884_v10  ;;  %2060 = vmatpush3.bf16.msra.mxu0 (%p2271_p10), %v2057_v41  ;;  %2082 = vmatpush3.bf16.msra.mxu1 (%p2271_p10), %v2057_v41  ;;  %v1242_v9 = vld [vmem:[#allocation2 + $0x38] sm:$0xff] (%p2271_p10) }
 0x18a   : > { %2062 = vmatprep.subr.bf16.mxu0 (%p2271_p10), %v2061_v46  ;;  %2075 = vmatprep.subr.bf16.mxu1 (%p2271_p10), %v2061_v46  ;;  %v1247_v0 = vld [vmem:[#allocation2 + $0x60] sm:$0xff] (%p2271_p10) }
 0x18b   : > { %1230 = vst [vmem:[#allocation2 + $0x70] sm:$0xff] %v1214_v6  ;;  %v1215_v16 = vadd.f32 %v1197_v15, %v749_v14  ;;  %1470 = vperm.xlu0 (%p2271_p10), %2130, %v1420_v52  }
 0x18c   : > { %1485 = vperm.xlu1 (%p2271_p10), %2131, %v1423_v53   ;;  %v1248_v5 = vld [vmem:[#allocation2 + $0x68] sm:$0xff] (%p2271_p10) }
 0x18d   : > { %1231 = vst [vmem:[#allocation2 + $0x78] sm:$0xff] %v1215_v16  ;;  %2064 = vmatpush3.bf16.msra.mxu0 (%p2271_p10), %v2061_v46  ;;  %2083 = vmatpush3.bf16.msra.mxu1 (%p2271_p10), %v2061_v46 }
 0x18e   : > { %2066 = vmatprep.subr.bf16.mxu0 %v2065_v51  ;;  %2076 = vmatprep.subr.bf16.mxu1 %v2065_v51 }
 0x18f   : > { %1480 = vperm.xlu0 %2130, %v1422_v54  }
 0x190   : > { %1495 = vperm.xlu1 %2131, %v1425_v59  }
 0x191   : > { %2068 = vmatpush3.bf16.msra.mxu0 %v2065_v51  ;;  %2084 = vmatpush3.bf16.msra.mxu1 %v2065_v51 }
 0x192   : > { %v1249_v8 = vld [vmem:[#allocation2 + $0x70] sm:$0xff] }
 0x193   : > { %1490 = vperm.xlu0 %2130, %v1424_v60  }
 0x194   : > { %2014 = vmatmul.mubr.f32.vlgmr.msra.gmra.mrb[0].mxu0 %v1236_v55  ;;  %2026 = vmatmul.mubr.f32.vlgmr.msra.gmra.mrb[0].mxu1 %v1244_v56  ;;  %v1250_v10 = vld [vmem:[#allocation2 + $0x78] sm:$0xff] }
 0x195   : > { %2016 = vmatprep.mubr.f32.mxu0 %v1237_v57  ;;  %2028 = vmatprep.mubr.f32.mxu1 %v1245_v58 }
 0x196   : > { %1505 = vperm.xlu1 %2131, %v1427_v1  }
 0x197   : > { %1500 = vperm.xlu0 %2130, %v1426_v2  }
 0x198   : > { %2017 = vmatmul.mubr.f32.gmra.mrb[2].mxu0 %v1238_v61  ;;  %2029 = vmatmul.mubr.f32.gmra.mrb[2].mxu1 %v1246_v62 }
 0x199   : > { %2019 = vmatprep.mubr.f32.mxu0 %v1239_v63  ;;  %2031 = vmatprep.mubr.f32.mxu1 %v1247_v0 }
 0x19c   : > { %2020 = vmatmul.mubr.f32.gmra.mrb[4].mxu0 %v1240_v4  ;;  %2032 = vmatmul.mubr.f32.gmra.mrb[4].mxu1 %v1248_v5 }
 0x19d   : > { %2022 = vmatprep.mubr.f32.mxu0 %v1241_v7  ;;  %2034 = vmatprep.mubr.f32.mxu1 %v1249_v8 }
 0x1a0   : > { %2023 = vmatmul.mubr.f32.gmra.mrb[6].mxu0 %v1242_v9  ;;  %2035 = vmatmul.mubr.f32.gmra.mrb[6].mxu1 %v1250_v10 }
 0x1f7   : > { %v1441_v3 = vpop.permute.xlu1 %1440 }
 0x1fa   : > { %v1431_v12 = vpop.permute.xlu0 %1430 }
 0x1fb   : > { %v1446_v13 = vpop.permute.xlu1 %1445 }
 0x1fe   : > { %v1436_v14 = vpop.permute.xlu0 %1435 }
 0x1ff   : > { %v1456_v6 = vpop.permute.xlu1 %1455 }
 0x202   : > { %v1451_v15 = vpop.permute.xlu0 %1450 }
 0x203   : > { %v1466_v16 = vpop.permute.xlu1 %1465 }
 0x206   : > { %v2494_v17 = vpop.permute.xlu0 %1460 }
 0x207   : > { %v1476_v18 = vpop.permute.xlu1 %1475 }
 0x20a   : > { %v1471_v11 = vpop.permute.xlu0 %1470 }
 0x20b   : > { %v1486_v19 = vpop.permute.xlu1 %1485 }
 0x20e   : > { %v1481_v20 = vpop.permute.xlu0 %1480 }
 0x20f   : > { %v1496_v30 = vpop.permute.xlu1 %1495 }
 0x212   : > { %v1491_v31 = vpop.permute.xlu0 %1490 }
 0x215   : > { %v1506_v56 = vpop.permute.xlu1 %1505 }
 0x216   : > { %v1501_v57 = vpop.permute.xlu0 %1500 }
 0x267   : > { %v2015_v21 = vpop.f32.mrb[0].mxu0  ;;  %v2027_v23 = vpop.f32.mrb[0].mxu1 }
 0x268   : > { %v1509_v24 = vmul.f32 %v2015_v21, %v1436_v14  ;;  %v1517_v25 = vmul.f32 %v2027_v23, %v1476_v18  ;;  %v1333_v26 = vpop.f32.mrb[1].mxu0  ;;  %v1373_v27 = vpop.f32.mrb[1].mxu1 }
 0x269   : > { %v1508_v28 = vmul.f32 %v1431_v12, %v1333_v26  ;;  %v1516_v29 = vmul.f32 %v1471_v11, %v1373_v27 }
 0x26a   : > { %v1532_v32 = vadd.f32 %v2499_v22, %v1509_v24  ;;  %v1540_v33 = vadd.f32 %v2499_v22, %v1517_v25 }
 0x26b   : > { %v1531_v34 = vadd.f32 %v2499_v22, %v1508_v28  ;;  %v1539_v35 = vadd.f32 %v2499_v22, %v1516_v29  ;;  %v2018_v36 = vpop.f32.mrb[2].mxu0  ;;  %v2030_v37 = vpop.f32.mrb[2].mxu1 }
 0x26c   : > { %1548 = vst [vmem:[%s2262_s19 + $0x8] sm:$0xff] %v1532_v32  ;;  %1556 = vst [vmem:[%s2262_s19 + $0x48] sm:$0xff] %v1540_v33  ;;  %v1511_v38 = vmul.f32 %v2018_v36, %v1446_v13  ;;  %v1519_v39 = vmul.f32 %v2030_v37, %v1486_v19  ;;  %v1343_v40 = vpop.f32.mrb[3].mxu0  ;;  %v1383_v41 = vpop.f32.mrb[3].mxu1 }
 0x26d   : > { %1547 = vst [vmem:[%s2262_s19] sm:$0xff] %v1531_v34  ;;  %1555 = vst [vmem:[%s2262_s19 + $0x40] sm:$0xff] %v1539_v35  ;;  %v1510_v42 = vmul.f32 %v1441_v3, %v1343_v40  ;;  %v1518_v43 = vmul.f32 %v1481_v20, %v1383_v41 }
 0x26e   : > { %v1534_v44 = vadd.f32 %v2499_v22, %v1511_v38  ;;  %v1542_v45 = vadd.f32 %v2499_v22, %v1519_v39 }
 0x26f   : > { %v1533_v46 = vadd.f32 %v2499_v22, %v1510_v42  ;;  %v1541_v47 = vadd.f32 %v2499_v22, %v1518_v43  ;;  %v2021_v48 = vpop.f32.mrb[4].mxu0  ;;  %v2033_v49 = vpop.f32.mrb[4].mxu1 }
 0x270   : > { %1550 = vst [vmem:[%s2262_s19 + $0x18] sm:$0xff] %v1534_v44  ;;  %1558 = vst [vmem:[%s2262_s19 + $0x58] sm:$0xff] %v1542_v45  ;;  %v1513_v50 = vmul.f32 %v2021_v48, %v1456_v6  ;;  %v1521_v51 = vmul.f32 %v2033_v49, %v1496_v30  ;;  %v1353_v52 = vpop.f32.mrb[5].mxu0  ;;  %v1393_v53 = vpop.f32.mrb[5].mxu1 }
 0x271   : > { %1549 = vst [vmem:[%s2262_s19 + $0x10] sm:$0xff] %v1533_v46  ;;  %1557 = vst [vmem:[%s2262_s19 + $0x50] sm:$0xff] %v1541_v47  ;;  %v1512_v54 = vmul.f32 %v1451_v15, %v1353_v52  ;;  %v1520_v55 = vmul.f32 %v1491_v31, %v1393_v53 }
 0x272   : > { %v1536_v58 = vadd.f32 %v2499_v22, %v1513_v50  ;;  %v1544_v59 = vadd.f32 %v2499_v22, %v1521_v51 }
 0x273   : > { %v1535_v60 = vadd.f32 %v2499_v22, %v1512_v54  ;;  %v1543_v61 = vadd.f32 %v2499_v22, %v1520_v55  ;;  %v2024_v62 = vpop.f32.mrb[6].mxu0  ;;  %v2036_v63 = vpop.f32.mrb[6].mxu1 }
 0x274   : > { %1552 = vst [vmem:[%s2262_s19 + $0x28] sm:$0xff] %v1536_v58  ;;  %1560 = vst [vmem:[%s2262_s19 + $0x68] sm:$0xff] %v1544_v59  ;;  %v1515_v0 = vmul.f32 %v2024_v62, %v1466_v16  ;;  %v1523_v1 = vmul.f32 %v2036_v63, %v1506_v56  ;;  %v1363_v2 = vpop.f32.mrb[7].mxu0  ;;  %v1403_v4 = vpop.f32.mrb[7].mxu1 }
 0x275   : > { %1551 = vst [vmem:[%s2262_s19 + $0x20] sm:$0xff] %v1535_v60  ;;  %1559 = vst [vmem:[%s2262_s19 + $0x60] sm:$0xff] %v1543_v61  ;;  %v1514_v5 = vmul.f32 %v2494_v17, %v1363_v2  ;;  %v1522_v7 = vmul.f32 %v1501_v57, %v1403_v4 }
 0x276   : > { %v1538_v8 = vadd.f32 %v2499_v22, %v1515_v0  ;;  %v1546_v9 = vadd.f32 %v2499_v22, %v1523_v1 }
 0x277   : > { %v1537_v10 = vadd.f32 %v2499_v22, %v1514_v5  ;;  %v1545_v3 = vadd.f32 %v2499_v22, %v1522_v7 }
 0x278   : > { %1554 = vst [vmem:[%s2262_s19 + $0x38] sm:$0xff] %v1538_v8  ;;  %1562 = vst [vmem:[%s2262_s19 + $0x78] sm:$0xff] %v1546_v9 }
 0x279   : > { %1553 = vst [vmem:[%s2262_s19 + $0x30] sm:$0xff] %v1537_v10  ;;  %1561 = vst [vmem:[%s2262_s19 + $0x70] sm:$0xff] %v1545_v3 }
 0x27a PF: > { %s27_s1 = sadd.s32 1, %s2164_s1  }
 0x27b   : > { %p24_p12 = scmp.ge.s32.totalorder %s27_s1, 4  }
 0x27d   :  { %26 = sbr.rel (!%p24_p12) target bundleno = 26 (0x1a), region = 88 }

</bundles_post_ra>
